<compile_context>
chip_gen: v5e
topology: v5e:2x2
jax: 0.10.0
libtpu: 0.0.40
codegen_flags: <defaults>
</compile_context>

<pallas_src>
import jax
import jax.numpy as jnp
from jax import lax
from jax.experimental import pallas as pl
from jax.experimental.pallas import tpu as pltpu

LANES = 128
K1_PAD = 80        # conv1 im2col K: 5*5*3 = 75 -> 80 (sublane friendly)
K2_PAD = 160       # conv2 im2col K: 5*5*6 = 150 -> 160
C1_LANES = 8       # conv1 activation storage lanes (6 real channels + 2 pad)
N_SPATIAL = 25     # 5x5 pooled conv2 output positions


# -----------------------------------------------------------------------------
# Pallas kernels
# -----------------------------------------------------------------------------
def _conv_pool_kernel(p_ref, w_ref, b_ref, o_ref):
    """o = max over 4 pooling phases of relu(p[phase] @ w + b), compact store.

    p_ref: (4, tm, K) bf16   w_ref: (K, 128) bf16   b_ref: (1, 128) f32
    o_ref: (tm, C1_LANES) bf16  (only lanes [:6] are real channels)
    """
    w = w_ref[...]
    b = b_ref[...]

    def phase(i):
        y = jnp.dot(p_ref[i], w, preferred_element_type=jnp.float32)
        return jnp.maximum(y + b, 0.0)

    pooled = jnp.maximum(jnp.maximum(phase(0), phase(1)),
                         jnp.maximum(phase(2), phase(3)))
    o_ref[...] = pooled[:, :o_ref.shape[1]].astype(o_ref.dtype)


def _conv2_fc_kernel(p2_ref, w2_ref, b2_ref, wf1_ref, bf1_ref, wf2_ref,
                     bf2_ref, wf3_ref, bf3_ref, o_ref):
    """conv2 (+bias+ReLU) + 2x2 pool + flatten + fc1 + fc2 + fc3, fused.

    p2_ref : (4, 25, tb, K2) bf16  phase-split im2col for one batch tile
    w2_ref : (K2, 128) bf16,  b2_ref: (1, 128) f32
    wf1_ref: (25, 128, 128) bf16  with wf1[s, c, o] = fc1_w[o, c*25 + s]
    wf2/wf3: (128, 128) bf16 transposed+padded fc weights, biases (1, 128) f32
    o_ref  : (tb, 128) f32 (only lanes [:10] are the real logits)
    """
    w2 = w2_ref[...]
    b2 = b2_ref[...]
    tb = o_ref.shape[0]

    def body(s, acc):
        def phase(i):
            y = jnp.dot(p2_ref[i, s], w2, preferred_element_type=jnp.float32)
            return jnp.maximum(y + b2, 0.0)

        # conv2 + bias + ReLU + 2x2 maxpool for spatial position s.
        pooled = jnp.maximum(jnp.maximum(phase(0), phase(1)),
                             jnp.maximum(phase(2), phase(3)))
        # fc1 partial contraction for this spatial position (PyTorch (C,H,W)
        # flatten order is baked into wf1's layout).
        return acc + jnp.dot(pooled.astype(jnp.bfloat16), wf1_ref[s],
                             preferred_element_type=jnp.float32)

    acc0 = jnp.zeros((tb, LANES), jnp.float32) + bf1_ref[...]
    h1 = jnp.maximum(lax.fori_loop(0, N_SPATIAL, body, acc0), 0.0)
    h1 = h1.astype(jnp.bfloat16)

    h2 = jnp.dot(h1, wf2_ref[...], preferred_element_type=jnp.float32) + bf2_ref[...]
    h2 = jnp.maximum(h2, 0.0).astype(jnp.bfloat16)

    o_ref[...] = (jnp.dot(h2, wf3_ref[...], preferred_element_type=jnp.float32)
                  + bf3_ref[...])


# -----------------------------------------------------------------------------
# pallas_call wrappers
# -----------------------------------------------------------------------------
def conv_pool(patches, w, b):
    """Fused conv1(+bias+ReLU)+2x2-maxpool via phase-split im2col matmuls."""
    n_phase, rows, k = patches.shape
    tm = rows if rows <= 512 else 512
    n_blocks = pl.cdiv(rows, tm)
    flops = 4 * 2 * rows * k * LANES
    bytes_acc = (patches.size * 2 + w.size * 2 + b.size * 4
                 + rows * C1_LANES * 2)
    return pl.pallas_call(
        _conv_pool_kernel,
        out_shape=jax.ShapeDtypeStruct((rows, C1_LANES), jnp.bfloat16),
        grid=(n_blocks,),
        in_specs=[
            pl.BlockSpec((n_phase, tm, k), lambda i: (0, i, 0)),
            pl.BlockSpec((k, LANES), lambda i: (0, 0)),
            pl.BlockSpec((1, LANES), lambda i: (0, 0)),
        ],
        out_specs=pl.BlockSpec((tm, C1_LANES), lambda i: (i, 0)),
        compiler_params=pltpu.CompilerParams(
            dimension_semantics=("parallel",)),
        cost_estimate=pl.CostEstimate(flops=flops, transcendentals=0,
                                      bytes_accessed=bytes_acc),
    )(patches, w, b)


def _batch_tile(batch):
    """Batch tile: multiple of 8 (or == batch), capped at 128, >=2 grid steps
    once the batch is big enough for megacore / pipelining to matter."""
    if batch <= 8:
        return batch
    half = (batch + 1) // 2
    return min(128, ((half + 7) // 8) * 8)


def conv2_pool_fc(p2, w2, b2, wf1, bf1, wf2, bf2, wf3, bf3):
    """conv2 + pool + fc1 + fc2 + fc3 in one pallas_call, batch-tiled."""
    n_phase, n_spatial, batch, k2 = p2.shape
    tb = _batch_tile(batch)
    n_blocks = pl.cdiv(batch, tb)
    flops = (n_spatial * 4 * 2 * batch * k2 * LANES
             + (n_spatial + 2) * 2 * batch * LANES * LANES)
    bytes_acc = (p2.size * 2 + w2.size * 2 + wf1.size * 2 + wf2.size * 2
                 + wf3.size * 2
                 + (b2.size + bf1.size + bf2.size + bf3.size) * 4
                 + batch * LANES * 4)
    return pl.pallas_call(
        _conv2_fc_kernel,
        out_shape=jax.ShapeDtypeStruct((batch, LANES), jnp.float32),
        grid=(n_blocks,),
        in_specs=[
            pl.BlockSpec((n_phase, n_spatial, tb, k2), lambda i: (0, 0, i, 0)),
            pl.BlockSpec((k2, LANES), lambda i: (0, 0)),
            pl.BlockSpec((1, LANES), lambda i: (0, 0)),
            pl.BlockSpec((n_spatial, LANES, LANES), lambda i: (0, 0, 0)),
            pl.BlockSpec((1, LANES), lambda i: (0, 0)),
            pl.BlockSpec((LANES, LANES), lambda i: (0, 0)),
            pl.BlockSpec((1, LANES), lambda i: (0, 0)),
            pl.BlockSpec((LANES, LANES), lambda i: (0, 0)),
            pl.BlockSpec((1, LANES), lambda i: (0, 0)),
        ],
        out_specs=pl.BlockSpec((tb, LANES), lambda i: (i, 0)),
        compiler_params=pltpu.CompilerParams(
            dimension_semantics=("parallel",)),
        cost_estimate=pl.CostEstimate(flops=flops, transcendentals=0,
                                      bytes_accessed=bytes_acc),
    )(p2, w2, b2, wf1, bf1, wf2, bf2, wf3, bf3)


# -----------------------------------------------------------------------------
# Wrapper-side im2col (pooling phases folded in; batch-minor row order)
# -----------------------------------------------------------------------------
def _pooled_patches(a, k_pad):
    """Phase-split im2col for a valid 5x5 conv whose output is 2x2/2 pooled.

    a: (H, W, B, C).  Returns ((4, Hp*Wp, B, k_pad) bf16, (Hp, Wp)).
    Phase p = 2*di+dj holds the patch for pooled output (h, w) taken at conv
    output position (2h+di, 2w+dj); K order is (ki, kj, c).
    """
    H, W, B, C = a.shape
    Hp, Wp = (H - 4) // 2, (W - 4) // 2
    K = 25 * C
    phases = []
    for di in range(2):
        for dj in range(2):
            cols = []
            for ki in range(5):
                for kj in range(5):
                    r0, c0 = di + ki, dj + kj
                    cols.append(a[r0:r0 + 2 * Hp - 1:2,
                                  c0:c0 + 2 * Wp - 1:2])   # (Hp, Wp, B, C)
            ph = jnp.concatenate(cols, axis=-1)             # (Hp, Wp, B, 25*C)
            phases.append(ph.reshape(Hp * Wp, B, K))
    p = jnp.stack(phases, axis=0)                           # (4, Hp*Wp, B, K)
    if k_pad > K:
        p = jnp.pad(p, ((0, 0), (0, 0), (0, 0), (0, k_pad - K)))
    return p.astype(jnp.bfloat16), (Hp, Wp)


# -----------------------------------------------------------------------------
# Parameters
# -----------------------------------------------------------------------------
def init_params(key):
    ks = jax.random.split(key, 10)

    def u(k, shape, fan_in):
        bound = 1.0 / jnp.sqrt(fan_in)
        return jax.random.uniform(k, shape, jnp.float32, -bound, bound)

    return {
        "conv1_w": u(ks[0], (6, 3, 5, 5), 3 * 5 * 5),
        "conv1_b": u(ks[1], (6,), 3 * 5 * 5),
        "conv2_w": u(ks[2], (16, 6, 5, 5), 6 * 5 * 5),
        "conv2_b": u(ks[3], (16,), 6 * 5 * 5),
        "fc1_w": u(ks[4], (120, 400), 400),   # PyTorch Linear: (out, in)
        "fc1_b": u(ks[5], (120,), 400),
        "fc2_w": u(ks[6], (84, 120), 120),
        "fc2_b": u(ks[7], (84,), 120),
        "fc3_w": u(ks[8], (10, 84), 84),
        "fc3_b": u(ks[9], (10,), 84),
    }


def prepare_params(p):
    """One-time re-layout: lane-padded-to-128 bf16 MXU weights, f32 biases."""
    def pad2(a, r, c):
        return jnp.zeros((r, c), a.dtype).at[:a.shape[0], :a.shape[1]].set(a)

    def padb(a, n):
        return jnp.zeros((1, n), jnp.float32).at[0, :a.shape[0]].set(
            a.astype(jnp.float32))

    # conv weights -> (kh*kw*Cin, Cout) matching the im2col (ki, kj, c) order.
    w1 = p["conv1_w"].transpose(2, 3, 1, 0).reshape(75, 6)
    w2 = p["conv2_w"].transpose(2, 3, 1, 0).reshape(150, 16)
    # fc1 with PyTorch (C,H,W)-flatten order folded in: wf1[s, c, o].
    wf1 = p["fc1_w"].reshape(120, 16, 25).transpose(2, 1, 0)    # (25, 16, 120)
    wf1p = jnp.zeros((25, LANES, LANES), jnp.float32).at[:, :16, :120].set(wf1)
    return {
        "w1": pad2(w1, K1_PAD, LANES).astype(jnp.bfloat16),
        "b1": padb(p["conv1_b"], LANES),
        "w2": pad2(w2, K2_PAD, LANES).astype(jnp.bfloat16),
        "b2": padb(p["conv2_b"], LANES),
        "wf1": wf1p.astype(jnp.bfloat16),
        "bf1": padb(p["fc1_b"], LANES),
        "wf2": pad2(p["fc2_w"].T, LANES, LANES).astype(jnp.bfloat16),
        "bf2": padb(p["fc2_b"], LANES),
        "wf3": pad2(p["fc3_w"].T, LANES, LANES).astype(jnp.bfloat16),
        "bf3": padb(p["fc3_b"], LANES),
    }


# -----------------------------------------------------------------------------
# Forward
# -----------------------------------------------------------------------------
def forward(prep, x):
    """x: (B, 3, 32, 32) NCHW float32 -> (B, 10) float32 logits."""
    B = x.shape[0]
    a0 = jnp.transpose(x, (2, 3, 0, 1))                        # (32, 32, B, 3)

    # conv1 + ReLU + pool (one pallas_call); rows ordered (h, w, b) so the
    # conv2 im2col below needs no transpose; compact bf16 (rows, 8) output.
    p1, (hp, wp) = _pooled_patches(a0, K1_PAD)                 # (4, 196, B, 80)
    rows = hp * wp * B
    pooled1 = conv_pool(p1.reshape(4, rows, K1_PAD),
                        prep["w1"], prep["b1"])                # (rows, 8) bf16
    act1 = pooled1.reshape(hp, wp, B, C1_LANES)[..., :6]       # (14, 14, B, 6)

    # conv2 + ReLU + pool + flatten + fc1 + fc2 + fc3 (one pallas_call),
    # batch-tiled over a "parallel" grid axis.
    p2, _ = _pooled_patches(act1, K2_PAD)                      # (4, 25, B, 160)
    out = conv2_pool_fc(p2, prep["w2"], prep["b2"], prep["wf1"], prep["bf1"],
                        prep["wf2"], prep["bf2"], prep["wf3"], prep["bf3"])
    return out[:, :10]


if __name__ == "__main__":
    key = jax.random.PRNGKey(0)
    kp, kx = jax.random.split(key)
    params = init_params(kp)
    prep = prepare_params(params)

    # CIFAR-10 input (fc1 = 16*5*5 forces 3x32x32), small batch.
    x = jax.random.normal(kx, (2, 3, 32, 32), dtype=jnp.float32)

    out = jax.jit(forward)(prep, x)
    out = jax.block_until_ready(out)
    assert out.shape == (2, 10) and out.dtype == jnp.float32
    print("KERNEL_OK")
</pallas_src>

<mosaic_0001>
module attributes {stable_mosaic.version = 11 : i64} {
  func.func @_conv_pool_kernel(%arg0: i32, %arg1: memref<4x392x80xbf16, #tpu.memory_space<vmem>>, %arg2: memref<80x128xbf16, #tpu.memory_space<vmem>>, %arg3: memref<1x128xf32, #tpu.memory_space<vmem>>, %arg4: memref<392x8xbf16, #tpu.memory_space<vmem>>) attributes {dimension_semantics = [#tpu.dimension_semantics<parallel>], iteration_bounds = array<i64: 1>, scalar_prefetch = 0 : i64, scratch_operands = 0 : i64, tpu.core_type = #tpu.core_type<tc>, window_params = [{transform_indices = @transform_0, window_bounds = array<i64: 4, 392, 80>}, {pipeline_mode = #tpu.pipeline_mode<synchronous>, transform_indices = @transform_1, window_bounds = array<i64: 80, 128>}, {pipeline_mode = #tpu.pipeline_mode<synchronous>, transform_indices = @transform_2, window_bounds = array<i64: 1, 128>}, {transform_indices = @transform_3, window_bounds = array<i64: 392, 8>}]} {
    %c0 = arith.constant 0 : index
    %c0_0 = arith.constant 0 : index
    %0 = vector.load %arg2[%c0, %c0_0] : memref<80x128xbf16, #tpu.memory_space<vmem>>, vector<80x128xbf16>
    %c0_1 = arith.constant 0 : index
    %c0_2 = arith.constant 0 : index
    %1 = vector.load %arg3[%c0_1, %c0_2] : memref<1x128xf32, #tpu.memory_space<vmem>>, vector<1x128xf32>
    %c0_3 = arith.constant 0 : index
    %c0_4 = arith.constant 0 : index
    %c0_5 = arith.constant 0 : index
    %2 = vector.load %arg1[%c0_3, %c0_4, %c0_5] : memref<4x392x80xbf16, #tpu.memory_space<vmem>>, vector<1x392x80xbf16>
    %3 = vector.shape_cast %2 : vector<1x392x80xbf16> to vector<392x80xbf16>
    %cst = arith.constant dense<0.000000e+00> : vector<392x128xf32>
    %4 = tpu.matmul %3, %0, %cst {dimension_numbers = #tpu.dot_dimension_numbers<[1], [0], [0], [1], [0, 0, 1, 1], [], []>} : vector<392x80xbf16>, vector<80x128xbf16>, vector<392x128xf32> -> vector<392x128xf32>
    %5 = vector.broadcast %1 : vector<1x128xf32> to vector<392x128xf32>
    %6 = arith.addf %4, %5 : vector<392x128xf32>
    %cst_6 = arith.constant 0.000000e+00 : f32
    %7 = vector.broadcast %cst_6 : f32 to vector<392x128xf32>
    %8 = arith.maximumf %6, %7 : vector<392x128xf32>
    %c1 = arith.constant 1 : index
    %c0_7 = arith.constant 0 : index
    %c0_8 = arith.constant 0 : index
    %9 = vector.load %arg1[%c1, %c0_7, %c0_8] : memref<4x392x80xbf16, #tpu.memory_space<vmem>>, vector<1x392x80xbf16>
    %10 = vector.shape_cast %9 : vector<1x392x80xbf16> to vector<392x80xbf16>
    %cst_9 = arith.constant dense<0.000000e+00> : vector<392x128xf32>
    %11 = tpu.matmul %10, %0, %cst_9 {dimension_numbers = #tpu.dot_dimension_numbers<[1], [0], [0], [1], [0, 0, 1, 1], [], []>} : vector<392x80xbf16>, vector<80x128xbf16>, vector<392x128xf32> -> vector<392x128xf32>
    %12 = vector.broadcast %1 : vector<1x128xf32> to vector<392x128xf32>
    %13 = arith.addf %11, %12 : vector<392x128xf32>
    %cst_10 = arith.constant 0.000000e+00 : f32
    %14 = vector.broadcast %cst_10 : f32 to vector<392x128xf32>
    %15 = arith.maximumf %13, %14 : vector<392x128xf32>
    %16 = arith.maximumf %8, %15 : vector<392x128xf32>
    %c2 = arith.constant 2 : index
    %c0_11 = arith.constant 0 : index
    %c0_12 = arith.constant 0 : index
    %17 = vector.load %arg1[%c2, %c0_11, %c0_12] : memref<4x392x80xbf16, #tpu.memory_space<vmem>>, vector<1x392x80xbf16>
    %18 = vector.shape_cast %17 : vector<1x392x80xbf16> to vector<392x80xbf16>
    %cst_13 = arith.constant dense<0.000000e+00> : vector<392x128xf32>
    %19 = tpu.matmul %18, %0, %cst_13 {dimension_numbers = #tpu.dot_dimension_numbers<[1], [0], [0], [1], [0, 0, 1, 1], [], []>} : vector<392x80xbf16>, vector<80x128xbf16>, vector<392x128xf32> -> vector<392x128xf32>
    %20 = vector.broadcast %1 : vector<1x128xf32> to vector<392x128xf32>
    %21 = arith.addf %19, %20 : vector<392x128xf32>
    %cst_14 = arith.constant 0.000000e+00 : f32
    %22 = vector.broadcast %cst_14 : f32 to vector<392x128xf32>
    %23 = arith.maximumf %21, %22 : vector<392x128xf32>
    %c3 = arith.constant 3 : index
    %c0_15 = arith.constant 0 : index
    %c0_16 = arith.constant 0 : index
    %24 = vector.load %arg1[%c3, %c0_15, %c0_16] : memref<4x392x80xbf16, #tpu.memory_space<vmem>>, vector<1x392x80xbf16>
    %25 = vector.shape_cast %24 : vector<1x392x80xbf16> to vector<392x80xbf16>
    %cst_17 = arith.constant dense<0.000000e+00> : vector<392x128xf32>
    %26 = tpu.matmul %25, %0, %cst_17 {dimension_numbers = #tpu.dot_dimension_numbers<[1], [0], [0], [1], [0, 0, 1, 1], [], []>} : vector<392x80xbf16>, vector<80x128xbf16>, vector<392x128xf32> -> vector<392x128xf32>
    %27 = vector.broadcast %1 : vector<1x128xf32> to vector<392x128xf32>
    %28 = arith.addf %26, %27 : vector<392x128xf32>
    %cst_18 = arith.constant 0.000000e+00 : f32
    %29 = vector.broadcast %cst_18 : f32 to vector<392x128xf32>
    %30 = arith.maximumf %28, %29 : vector<392x128xf32>
    %31 = arith.maximumf %23, %30 : vector<392x128xf32>
    %32 = arith.maximumf %16, %31 : vector<392x128xf32>
    %33 = vector.extract_strided_slice %32 {offsets = [0, 0], sizes = [392, 8], strides = [1, 1]} : vector<392x128xf32> to vector<392x8xf32>
    %34 = arith.truncf %33 : vector<392x8xf32> to vector<392x8xbf16>
    %c0_19 = arith.constant 0 : index
    %c0_20 = arith.constant 0 : index
    %35 = vector.load %arg4[%c0_19, %c0_20] : memref<392x8xbf16, #tpu.memory_space<vmem>>, vector<392x8xbf16>
    tpu.vector_store %arg4[%c0_19, %c0_20], %34 {strides = array<i32>} : memref<392x8xbf16, #tpu.memory_space<vmem>>, vector<392x8xbf16>,
    return
  }
  func.func @transform_0(%arg0: i32) -> (i32, i32, i32) {
    %c0_i32 = arith.constant 0 : i32
    %c0_i32_0 = arith.constant 0 : i32
    %c0_i32_1 = arith.constant 0 : i32
    return %c0_i32, %arg0, %c0_i32_0 : i32, i32, i32
  }
  func.func @transform_1(%arg0: i32) -> (i32, i32) {
    %c0_i32 = arith.constant 0 : i32
    %c0_i32_0 = arith.constant 0 : i32
    %c0_i32_1 = arith.constant 0 : i32
    return %c0_i32, %c0_i32_0 : i32, i32
  }
  func.func @transform_2(%arg0: i32) -> (i32, i32) {
    %c0_i32 = arith.constant 0 : i32
    %c0_i32_0 = arith.constant 0 : i32
    %c0_i32_1 = arith.constant 0 : i32
    return %c0_i32, %c0_i32_0 : i32, i32
  }
  func.func @transform_3(%arg0: i32) -> (i32, i32) {
    %c0_i32 = arith.constant 0 : i32
    %c0_i32_0 = arith.constant 0 : i32
    return %arg0, %c0_i32 : i32, i32
  }
}

module attributes {stable_mosaic.version = 11 : i64} {
  func.func @_conv2_fc_kernel(%arg0: i32, %arg1: memref<4x25x2x160xbf16, #tpu.memory_space<vmem>>, %arg2: memref<160x128xbf16, #tpu.memory_space<vmem>>, %arg3: memref<1x128xf32, #tpu.memory_space<vmem>>, %arg4: memref<25x128x128xbf16, #tpu.memory_space<vmem>>, %arg5: memref<1x128xf32, #tpu.memory_space<vmem>>, %arg6: memref<128x128xbf16, #tpu.memory_space<vmem>>, %arg7: memref<1x128xf32, #tpu.memory_space<vmem>>, %arg8: memref<128x128xbf16, #tpu.memory_space<vmem>>, %arg9: memref<1x128xf32, #tpu.memory_space<vmem>>, %arg10: memref<2x128xf32, #tpu.memory_space<vmem>>) attributes {dimension_semantics = [#tpu.dimension_semantics<parallel>], iteration_bounds = array<i64: 1>, scalar_prefetch = 0 : i64, scratch_operands = 0 : i64, tpu.core_type = #tpu.core_type<tc>, window_params = [{transform_indices = @transform_0, window_bounds = array<i64: 4, 25, 2, 160>}, {pipeline_mode = #tpu.pipeline_mode<synchronous>, transform_indices = @transform_1, window_bounds = array<i64: 160, 128>}, {pipeline_mode = #tpu.pipeline_mode<synchronous>, transform_indices = @transform_2, window_bounds = array<i64: 1, 128>}, {pipeline_mode = #tpu.pipeline_mode<synchronous>, transform_indices = @transform_3, window_bounds = array<i64: 25, 128, 128>}, {pipeline_mode = #tpu.pipeline_mode<synchronous>, transform_indices = @transform_4, window_bounds = array<i64: 1, 128>}, {pipeline_mode = #tpu.pipeline_mode<synchronous>, transform_indices = @transform_5, window_bounds = array<i64: 128, 128>}, {pipeline_mode = #tpu.pipeline_mode<synchronous>, transform_indices = @transform_6, window_bounds = array<i64: 1, 128>}, {pipeline_mode = #tpu.pipeline_mode<synchronous>, transform_indices = @transform_7, window_bounds = array<i64: 128, 128>}, {pipeline_mode = #tpu.pipeline_mode<synchronous>, transform_indices = @transform_8, window_bounds = array<i64: 1, 128>}, {transform_indices = @transform_9, window_bounds = array<i64: 2, 128>}]} {
    %c0 = arith.constant 0 : index
    %c0_0 = arith.constant 0 : index
    %0 = vector.load %arg2[%c0, %c0_0] : memref<160x128xbf16, #tpu.memory_space<vmem>>, vector<160x128xbf16>
    %c0_1 = arith.constant 0 : index
    %c0_2 = arith.constant 0 : index
    %1 = vector.load %arg3[%c0_1, %c0_2] : memref<1x128xf32, #tpu.memory_space<vmem>>, vector<1x128xf32>
    %cst = arith.constant 0.000000e+00 : f32
    %2 = vector.broadcast %cst : f32 to vector<2x128xf32>
    %c0_3 = arith.constant 0 : index
    %c0_4 = arith.constant 0 : index
    %3 = vector.load %arg5[%c0_3, %c0_4] : memref<1x128xf32, #tpu.memory_space<vmem>>, vector<1x128xf32>
    %4 = vector.broadcast %3 : vector<1x128xf32> to vector<2x128xf32>
    %5 = arith.addf %2, %4 : vector<2x128xf32>
    %c0_i32 = arith.constant 0 : i32
    %c25_i32 = arith.constant 25 : i32
    %6 = arith.addi %c0_i32, %c25_i32 : i32
    %c1_i32 = arith.constant 1 : i32
    %7 = scf.for %arg11 = %c0_i32 to %6 step %c1_i32 iter_args(%arg12 = %5) -> (vector<2x128xf32>)  : i32 {
      %c0_20 = arith.constant 0 : index
      %25 = arith.index_cast %arg11 : i32 to index
      %c0_21 = arith.constant 0 : index
      %c0_22 = arith.constant 0 : index
      %26 = vector.load %arg1[%c0_20, %25, %c0_21, %c0_22] : memref<4x25x2x160xbf16, #tpu.memory_space<vmem>>, vector<1x1x2x160xbf16>
      %27 = vector.shape_cast %26 : vector<1x1x2x160xbf16> to vector<2x160xbf16>
      %cst_23 = arith.constant dense<0.000000e+00> : vector<2x128xf32>
      %28 = tpu.matmul %27, %0, %cst_23 {dimension_numbers = #tpu.dot_dimension_numbers<[1], [0], [0], [1], [0, 0, 1, 1], [], []>} : vector<2x160xbf16>, vector<160x128xbf16>, vector<2x128xf32> -> vector<2x128xf32>
      %29 = vector.broadcast %1 : vector<1x128xf32> to vector<2x128xf32>
      %30 = arith.addf %28, %29 : vector<2x128xf32>
      %cst_24 = arith.constant 0.000000e+00 : f32
      %31 = vector.broadcast %cst_24 : f32 to vector<2x128xf32>
      %32 = arith.maximumf %30, %31 : vector<2x128xf32>
      %c1 = arith.constant 1 : index
      %33 = arith.index_cast %arg11 : i32 to index
      %c0_25 = arith.constant 0 : index
      %c0_26 = arith.constant 0 : index
      %34 = vector.load %arg1[%c1, %33, %c0_25, %c0_26] : memref<4x25x2x160xbf16, #tpu.memory_space<vmem>>, vector<1x1x2x160xbf16>
      %35 = vector.shape_cast %34 : vector<1x1x2x160xbf16> to vector<2x160xbf16>
      %cst_27 = arith.constant dense<0.000000e+00> : vector<2x128xf32>
      %36 = tpu.matmul %35, %0, %cst_27 {dimension_numbers = #tpu.dot_dimension_numbers<[1], [0], [0], [1], [0, 0, 1, 1], [], []>} : vector<2x160xbf16>, vector<160x128xbf16>, vector<2x128xf32> -> vector<2x128xf32>
      %37 = vector.broadcast %1 : vector<1x128xf32> to vector<2x128xf32>
      %38 = arith.addf %36, %37 : vector<2x128xf32>
      %cst_28 = arith.constant 0.000000e+00 : f32
      %39 = vector.broadcast %cst_28 : f32 to vector<2x128xf32>
      %40 = arith.maximumf %38, %39 : vector<2x128xf32>
      %41 = arith.maximumf %32, %40 : vector<2x128xf32>
      %c2 = arith.constant 2 : index
      %42 = arith.index_cast %arg11 : i32 to index
      %c0_29 = arith.constant 0 : index
      %c0_30 = arith.constant 0 : index
      %43 = vector.load %arg1[%c2, %42, %c0_29, %c0_30] : memref<4x25x2x160xbf16, #tpu.memory_space<vmem>>, vector<1x1x2x160xbf16>
      %44 = vector.shape_cast %43 : vector<1x1x2x160xbf16> to vector<2x160xbf16>
      %cst_31 = arith.constant dense<0.000000e+00> : vector<2x128xf32>
      %45 = tpu.matmul %44, %0, %cst_31 {dimension_numbers = #tpu.dot_dimension_numbers<[1], [0], [0], [1], [0, 0, 1, 1], [], []>} : vector<2x160xbf16>, vector<160x128xbf16>, vector<2x128xf32> -> vector<2x128xf32>
      %46 = vector.broadcast %1 : vector<1x128xf32> to vector<2x128xf32>
      %47 = arith.addf %45, %46 : vector<2x128xf32>
      %cst_32 = arith.constant 0.000000e+00 : f32
      %48 = vector.broadcast %cst_32 : f32 to vector<2x128xf32>
      %49 = arith.maximumf %47, %48 : vector<2x128xf32>
      %c3 = arith.constant 3 : index
      %50 = arith.index_cast %arg11 : i32 to index
      %c0_33 = arith.constant 0 : index
      %c0_34 = arith.constant 0 : index
      %51 = vector.load %arg1[%c3, %50, %c0_33, %c0_34] : memref<4x25x2x160xbf16, #tpu.memory_space<vmem>>, vector<1x1x2x160xbf16>
      %52 = vector.shape_cast %51 : vector<1x1x2x160xbf16> to vector<2x160xbf16>
      %cst_35 = arith.constant dense<0.000000e+00> : vector<2x128xf32>
      %53 = tpu.matmul %52, %0, %cst_35 {dimension_numbers = #tpu.dot_dimension_numbers<[1], [0], [0], [1], [0, 0, 1, 1], [], []>} : vector<2x160xbf16>, vector<160x128xbf16>, vector<2x128xf32> -> vector<2x128xf32>
      %54 = vector.broadcast %1 : vector<1x128xf32> to vector<2x128xf32>
      %55 = arith.addf %53, %54 : vector<2x128xf32>
      %cst_36 = arith.constant 0.000000e+00 : f32
      %56 = vector.broadcast %cst_36 : f32 to vector<2x128xf32>
      %57 = arith.maximumf %55, %56 : vector<2x128xf32>
      %58 = arith.maximumf %49, %57 : vector<2x128xf32>
      %59 = arith.maximumf %41, %58 : vector<2x128xf32>
      %60 = arith.truncf %59 : vector<2x128xf32> to vector<2x128xbf16>
      %61 = arith.index_cast %arg11 : i32 to index
      %c0_37 = arith.constant 0 : index
      %c0_38 = arith.constant 0 : index
      %62 = vector.load %arg4[%61, %c0_37, %c0_38] : memref<25x128x128xbf16, #tpu.memory_space<vmem>>, vector<1x128x128xbf16>
      %63 = vector.shape_cast %62 : vector<1x128x128xbf16> to vector<128x128xbf16>
      %cst_39 = arith.constant dense<0.000000e+00> : vector<2x128xf32>
      %64 = tpu.matmul %60, %63, %cst_39 {dimension_numbers = #tpu.dot_dimension_numbers<[1], [0], [0], [1], [0, 0, 1, 1], [], []>} : vector<2x128xbf16>, vector<128x128xbf16>, vector<2x128xf32> -> vector<2x128xf32>
      %65 = arith.addf %arg12, %64 : vector<2x128xf32>
      scf.yield %65 : vector<2x128xf32>
    }
    %c25_i32_5 = arith.constant 25 : i32
    %cst_6 = arith.constant 0.000000e+00 : f32
    %8 = vector.broadcast %cst_6 : f32 to vector<2x128xf32>
    %9 = arith.maximumf %7, %8 : vector<2x128xf32>
    %10 = arith.truncf %9 : vector<2x128xf32> to vector<2x128xbf16>
    %c0_7 = arith.constant 0 : index
    %c0_8 = arith.constant 0 : index
    %11 = vector.load %arg6[%c0_7, %c0_8] : memref<128x128xbf16, #tpu.memory_space<vmem>>, vector<128x128xbf16>
    %cst_9 = arith.constant dense<0.000000e+00> : vector<2x128xf32>
    %12 = tpu.matmul %10, %11, %cst_9 {dimension_numbers = #tpu.dot_dimension_numbers<[1], [0], [0], [1], [0, 0, 1, 1], [], []>} : vector<2x128xbf16>, vector<128x128xbf16>, vector<2x128xf32> -> vector<2x128xf32>
    %c0_10 = arith.constant 0 : index
    %c0_11 = arith.constant 0 : index
    %13 = vector.load %arg7[%c0_10, %c0_11] : memref<1x128xf32, #tpu.memory_space<vmem>>, vector<1x128xf32>
    %14 = vector.broadcast %13 : vector<1x128xf32> to vector<2x128xf32>
    %15 = arith.addf %12, %14 : vector<2x128xf32>
    %cst_12 = arith.constant 0.000000e+00 : f32
    %16 = vector.broadcast %cst_12 : f32 to vector<2x128xf32>
    %17 = arith.maximumf %15, %16 : vector<2x128xf32>
    %18 = arith.truncf %17 : vector<2x128xf32> to vector<2x128xbf16>
    %c0_13 = arith.constant 0 : index
    %c0_14 = arith.constant 0 : index
    %19 = vector.load %arg8[%c0_13, %c0_14] : memref<128x128xbf16, #tpu.memory_space<vmem>>, vector<128x128xbf16>
    %cst_15 = arith.constant dense<0.000000e+00> : vector<2x128xf32>
    %20 = tpu.matmul %18, %19, %cst_15 {dimension_numbers = #tpu.dot_dimension_numbers<[1], [0], [0], [1], [0, 0, 1, 1], [], []>} : vector<2x128xbf16>, vector<128x128xbf16>, vector<2x128xf32> -> vector<2x128xf32>
    %c0_16 = arith.constant 0 : index
    %c0_17 = arith.constant 0 : index
    %21 = vector.load %arg9[%c0_16, %c0_17] : memref<1x128xf32, #tpu.memory_space<vmem>>, vector<1x128xf32>
    %22 = vector.broadcast %21 : vector<1x128xf32> to vector<2x128xf32>
    %23 = arith.addf %20, %22 : vector<2x128xf32>
    %c0_18 = arith.constant 0 : index
    %c0_19 = arith.constant 0 : index
    %24 = vector.load %arg10[%c0_18, %c0_19] : memref<2x128xf32, #tpu.memory_space<vmem>>, vector<2x128xf32>
    tpu.vector_store %arg10[%c0_18, %c0_19], %23 {strides = array<i32>} : memref<2x128xf32, #tpu.memory_space<vmem>>, vector<2x128xf32>,
    return
  }
  func.func @transform_0(%arg0: i32) -> (i32, i32, i32, i32) {
    %c0_i32 = arith.constant 0 : i32
    %c0_i32_0 = arith.constant 0 : i32
    %c0_i32_1 = arith.constant 0 : i32
    %c0_i32_2 = arith.constant 0 : i32
    return %c0_i32, %c0_i32_0, %arg0, %c0_i32_1 : i32, i32, i32, i32
  }
  func.func @transform_1(%arg0: i32) -> (i32, i32) {
    %c0_i32 = arith.constant 0 : i32
    %c0_i32_0 = arith.constant 0 : i32
    %c0_i32_1 = arith.constant 0 : i32
    return %c0_i32, %c0_i32_0 : i32, i32
  }
  func.func @transform_2(%arg0: i32) -> (i32, i32) {
    %c0_i32 = arith.constant 0 : i32
    %c0_i32_0 = arith.constant 0 : i32
    %c0_i32_1 = arith.constant 0 : i32
    return %c0_i32, %c0_i32_0 : i32, i32
  }
  func.func @transform_3(%arg0: i32) -> (i32, i32, i32) {
    %c0_i32 = arith.constant 0 : i32
    %c0_i32_0 = arith.constant 0 : i32
    %c0_i32_1 = arith.constant 0 : i32
    %c0_i32_2 = arith.constant 0 : i32
    return %c0_i32, %c0_i32_0, %c0_i32_1 : i32, i32, i32
  }
  func.func @transform_4(%arg0: i32) -> (i32, i32) {
    %c0_i32 = arith.constant 0 : i32
    %c0_i32_0 = arith.constant 0 : i32
    %c0_i32_1 = arith.constant 0 : i32
    return %c0_i32, %c0_i32_0 : i32, i32
  }
  func.func @transform_5(%arg0: i32) -> (i32, i32) {
    %c0_i32 = arith.constant 0 : i32
    %c0_i32_0 = arith.constant 0 : i32
    %c0_i32_1 = arith.constant 0 : i32
    return %c0_i32, %c0_i32_0 : i32, i32
  }
  func.func @transform_6(%arg0: i32) -> (i32, i32) {
    %c0_i32 = arith.constant 0 : i32
    %c0_i32_0 = arith.constant 0 : i32
    %c0_i32_1 = arith.constant 0 : i32
    return %c0_i32, %c0_i32_0 : i32, i32
  }
  func.func @transform_7(%arg0: i32) -> (i32, i32) {
    %c0_i32 = arith.constant 0 : i32
    %c0_i32_0 = arith.constant 0 : i32
    %c0_i32_1 = arith.constant 0 : i32
    return %c0_i32, %c0_i32_0 : i32, i32
  }
  func.func @transform_8(%arg0: i32) -> (i32, i32) {
    %c0_i32 = arith.constant 0 : i32
    %c0_i32_0 = arith.constant 0 : i32
    %c0_i32_1 = arith.constant 0 : i32
    return %c0_i32, %c0_i32_0 : i32, i32
  }
  func.func @transform_9(%arg0: i32) -> (i32, i32) {
    %c0_i32 = arith.constant 0 : i32
    %c0_i32_0 = arith.constant 0 : i32
    return %arg0, %c0_i32 : i32, i32
  }
}

</mosaic_0001>

<bundles_post_ra>
// kernel: forward.2
= control target key start
LH: loop header
LB: loop body
LE: loop exit
PB: predicated region body
PF: predicated region fallthrough
CT: control target
= control target key end

     0   :  { %vm231_vm0 = vcmask 654336   ;;  %vm1975_vm1 = vcmask 60416   ;;  %s3620_s1 = inlined_call_operand.vmem [shape: bf16[80,128], index: 1, kind: input, shape index: {}]   ;;  %s3621_s2 = inlined_call_operand.vmem [shape: f32[1,128], index: 2, kind: input, shape index: {}]   ;;  %s3622_s0 = inlined_call_operand.vmem [shape: bf16[4,392,80], index: 0, kind: input, shape index: {}]   ;;  %s3623_s3 = inlined_call_operand.vmem [shape: bf16[392,8], index: 3, kind: output, shape index: {}]  }
   0x1   :  { %v2684_v0 = vld [vmem:[%s3620_s1 + $0x20] sm:$0xff]  ;;  %v2683_v1 = vld [vmem:[%s3620_s1 + $0x18] sm:$0xff]  ;;  %v2682_v2 = vld [vmem:[%s3620_s1 + $0x10] sm:$0xff] }
   0x2   :  { %310 = vmatpush.bf16.msra.mxu0 %v2684_v0  ;;  %740 = vmatpush.bf16.msra.mxu1 %v2684_v0  ;;  %v2681_v3 = vld [vmem:[%s3620_s1 + $0x8] sm:$0xff]  ;;  %v2680_v4 = vld [vmem:[%s3620_s1] sm:$0xff]  ;;  %v2734_v11 = vld [vmem:[%s3622_s0 + $0x190] sm:$0xff] }
   0x3   :  { %1219 = vmatpush.bf16.msra.mxu2 %v2684_v0  ;;  %1649 = vmatpush.bf16.msra.mxu3 %v2684_v0  ;;  %v2685_v5 = vld [vmem:[%s3622_s0] sm:$0xff]  ;;  %v2733_v7 = vld [vmem:[%s3622_s0 + $0x188] sm:$0xff]  ;;  %v2758_v12 = vld [vmem:[%s3622_s0 + $0x254] sm:$0xff] }
   0x4   :  { %v2709_v6 = vld [vmem:[%s3622_s0 + $0xc4] sm:$0xff]  ;;  %v2757_v8 = vld [vmem:[%s3622_s0 + $0x24c] sm:$0xff]  ;;  %v2711_v14 = vld [vmem:[%s3622_s0 + $0xd4] sm:$0xff] }
   0x5   :  { %v2686_v9 = vld [vmem:[%s3622_s0 + $0x8] sm:$0xff]  ;;  %v2687_v13 = vld [vmem:[%s3622_s0 + $0x10] sm:$0xff]  ;;  %v2735_v15 = vld [vmem:[%s3622_s0 + $0x198] sm:$0xff] }
   0x6   :  { %311 = vmatpush.bf16.msra.mxu0 %v2683_v1  ;;  %741 = vmatpush.bf16.msra.mxu1 %v2683_v1  ;;  %v2710_v10 = vld [vmem:[%s3622_s0 + $0xcc] sm:$0xff]  ;;  %v2759_v16 = vld [vmem:[%s3622_s0 + $0x25c] sm:$0xff]  ;;  %v2760_v20 = vld [vmem:[%s3622_s0 + $0x264] sm:$0xff] }
   0x7   :  { %1220 = vmatpush.bf16.msra.mxu2 %v2683_v1  ;;  %1650 = vmatpush.bf16.msra.mxu3 %v2683_v1  ;;  %v2688_v17 = vld [vmem:[%s3622_s0 + $0x18] sm:$0xff]  ;;  %v2736_v19 = vld [vmem:[%s3622_s0 + $0x1a0] sm:$0xff]  ;;  %v2737_v23 = vld [vmem:[%s3622_s0 + $0x1a8] sm:$0xff] }
   0x8   :  { %v2712_v18 = vld [vmem:[%s3622_s0 + $0xdc] sm:$0xff]  ;;  %v2713_v22 = vld [vmem:[%s3622_s0 + $0xe4] sm:$0xff]  ;;  %v2761_v24 = vld [vmem:[%s3622_s0 + $0x26c] sm:$0xff] }
   0x9   :  { %v2689_v21 = vld [vmem:[%s3622_s0 + $0x20] sm:$0xff]  ;;  %v2690_v25 = vld [vmem:[%s3622_s0 + $0x28] sm:$0xff]  ;;  %v2738_v27 = vld [vmem:[%s3622_s0 + $0x1b0] sm:$0xff] }
   0xa   :  { %312 = vmatpush.bf16.msra.mxu0 %v2682_v2  ;;  %742 = vmatpush.bf16.msra.mxu1 %v2682_v2  ;;  %v2714_v26 = vld [vmem:[%s3622_s0 + $0xec] sm:$0xff]  ;;  %v2762_v28 = vld [vmem:[%s3622_s0 + $0x274] sm:$0xff]  ;;  %v2763_v32 = vld [vmem:[%s3622_s0 + $0x27c] sm:$0xff] }
   0xb   :  { %1221 = vmatpush.bf16.msra.mxu2 %v2682_v2  ;;  %1651 = vmatpush.bf16.msra.mxu3 %v2682_v2  ;;  %v2691_v29 = vld [vmem:[%s3622_s0 + $0x30] sm:$0xff]  ;;  %v2739_v31 = vld [vmem:[%s3622_s0 + $0x1b8] sm:$0xff]  ;;  %v2740_v35 = vld [vmem:[%s3622_s0 + $0x1c0] sm:$0xff] }
   0xc   :  { %v2715_v30 = vld [vmem:[%s3622_s0 + $0xf4] sm:$0xff]  ;;  %v2716_v34 = vld [vmem:[%s3622_s0 + $0xfc] sm:$0xff]  ;;  %v2764_v36 = vld [vmem:[%s3622_s0 + $0x284] sm:$0xff] }
   0xd   :  { %v2692_v33 = vld [vmem:[%s3622_s0 + $0x38] sm:$0xff]  ;;  %v2949_v37 = vld [vmem:[%s3621_s2] ss:$0 sm:$0xff]  ;;  %v2717_v39 = vld [vmem:[%s3622_s0 + $0x104] sm:$0xff] }
   0xe   :  { %313 = vmatpush.bf16.msra.mxu0 %v2681_v3  ;;  %743 = vmatpush.bf16.msra.mxu1 %v2681_v3  ;;  %v2693_v38 = vld [vmem:[%s3622_s0 + $0x40] sm:$0xff]  ;;  %v2741_v42 = vld [vmem:[%s3622_s0 + $0x1c8] sm:$0xff] }
   0xf   :  { %1222 = vmatpush.bf16.msra.mxu2 %v2681_v3  ;;  %1652 = vmatpush.bf16.msra.mxu3 %v2681_v3  ;;  %v2765_v43 = vld [vmem:[%s3622_s0 + $0x28c] sm:$0xff] }
  0x10   :  { %v2694_v0 = vld [vmem:[%s3622_s0 + $0x48] sm:$0xff] }
  0x11   :  { %v2718_v1 = vld [vmem:[%s3622_s0 + $0x10c] sm:$0xff] }
  0x12   :  { %314 = vmatpush.bf16.msra.mxu0 %v2680_v4  ;;  %744 = vmatpush.bf16.msra.mxu1 %v2680_v4 }
  0x13   :  { %1223 = vmatpush.bf16.msra.mxu2 %v2680_v4  ;;  %1653 = vmatpush.bf16.msra.mxu3 %v2680_v4 }
  0x15   :  { %2145 = vmatmul.msk.bf16.vlgmr.msra.gmra.mxu0 %vm231_vm0, %v2685_v5  ;;  %2315 = vmatmul.msk.bf16.vlgmr.msra.gmra.mxu1 %vm231_vm0, %v2709_v6 }
  0x16   :  { %2485 = vmatmul.msk.bf16.vlgmr.msra.gmra.mxu2 %vm231_vm0, %v2733_v7  ;;  %2655 = vmatmul.msk.bf16.vlgmr.msra.gmra.mxu3 %vm231_vm0, %v2757_v8  ;;  %v2742_v8 = vld [vmem:[%s3622_s0 + $0x1d0] sm:$0xff] }
  0x25   :  { %2146 = vmatmul.msk.bf16.gmra.mxu0 %vm231_vm0, %v2686_v9  ;;  %2316 = vmatmul.msk.bf16.gmra.mxu1 %vm231_vm0, %v2710_v10  ;;  %v2766_v9 = vld [vmem:[%s3622_s0 + $0x294] sm:$0xff] }
  0x26   :  { %2486 = vmatmul.msk.bf16.gmra.mxu2 %vm231_vm0, %v2734_v11  ;;  %2656 = vmatmul.msk.bf16.gmra.mxu3 %vm231_vm0, %v2758_v12 }
  0x35   :  { %2147 = vmatmul.msk.bf16.gmra.mxu0 %vm231_vm0, %v2687_v13  ;;  %2317 = vmatmul.msk.bf16.gmra.mxu1 %vm231_vm0, %v2711_v14 }
  0x36   :  { %2487 = vmatmul.msk.bf16.gmra.mxu2 %vm231_vm0, %v2735_v15  ;;  %2657 = vmatmul.msk.bf16.gmra.mxu3 %vm231_vm0, %v2759_v16 }
  0x45   :  { %2148 = vmatmul.msk.bf16.gmra.mxu0 %vm231_vm0, %v2688_v17  ;;  %2318 = vmatmul.msk.bf16.gmra.mxu1 %vm231_vm0, %v2712_v18 }
  0x46   :  { %2488 = vmatmul.msk.bf16.gmra.mxu2 %vm231_vm0, %v2736_v19  ;;  %2658 = vmatmul.msk.bf16.gmra.mxu3 %vm231_vm0, %v2760_v20 }
  0x55   :  { %2149 = vmatmul.msk.bf16.gmra.mxu0 %vm231_vm0, %v2689_v21  ;;  %2319 = vmatmul.msk.bf16.gmra.mxu1 %vm231_vm0, %v2713_v22 }
  0x56   :  { %2489 = vmatmul.msk.bf16.gmra.mxu2 %vm231_vm0, %v2737_v23  ;;  %2659 = vmatmul.msk.bf16.gmra.mxu3 %vm231_vm0, %v2761_v24 }
  0x65   :  { %2150 = vmatmul.msk.bf16.gmra.mxu0 %vm231_vm0, %v2690_v25  ;;  %2320 = vmatmul.msk.bf16.gmra.mxu1 %vm231_vm0, %v2714_v26 }
  0x66   :  { %2490 = vmatmul.msk.bf16.gmra.mxu2 %vm231_vm0, %v2738_v27  ;;  %2660 = vmatmul.msk.bf16.gmra.mxu3 %vm231_vm0, %v2762_v28 }
  0x75   :  { %2151 = vmatmul.msk.bf16.gmra.mxu0 %vm231_vm0, %v2691_v29  ;;  %2321 = vmatmul.msk.bf16.gmra.mxu1 %vm231_vm0, %v2715_v30 }
  0x76   :  { %2491 = vmatmul.msk.bf16.gmra.mxu2 %vm231_vm0, %v2739_v31  ;;  %2661 = vmatmul.msk.bf16.gmra.mxu3 %vm231_vm0, %v2763_v32 }
  0x85   :  { %2152 = vmatmul.msk.bf16.gmra.mxu0 %vm231_vm0, %v2692_v33  ;;  %2322 = vmatmul.msk.bf16.gmra.mxu1 %vm231_vm0, %v2716_v34 }
  0x86   :  { %2492 = vmatmul.msk.bf16.gmra.mxu2 %vm231_vm0, %v2740_v35  ;;  %2662 = vmatmul.msk.bf16.gmra.mxu3 %vm231_vm0, %v2764_v36  ;;  %v2695_v36 = vld [vmem:[%s3622_s0 + $0x50] sm:$0xff] }
  0x92   :  { %v316_v40 = vpop.f32.mrf.mxu0  ;;  %v746_v41 = vpop.f32.mrf.mxu1 }
  0x93   :  { %v317_v44 = vadd.f32 %v2949_v37, %v316_v40  ;;  %v747_v45 = vadd.f32 %v2949_v37, %v746_v41 }
  0x95   :  { %2153 = vmatmul.msk.bf16.gmra.mxu0 %vm231_vm0, %v2693_v38  ;;  %2323 = vmatmul.msk.bf16.gmra.mxu1 %vm231_vm0, %v2717_v39  ;;  %v440_v46 = vmax.f32 %v317_v44, 0.0  ;;  %v870_v47 = vmax.f32 %v747_v45, 0.0  ;;  %v2719_v38 = vld [vmem:[%s3622_s0 + $0x114] sm:$0xff] }
  0x96   :  { %2493 = vmatmul.msk.bf16.gmra.mxu2 %vm231_vm0, %v2741_v42  ;;  %2663 = vmatmul.msk.bf16.gmra.mxu3 %vm231_vm0, %v2765_v43  ;;  %v2743_v45 = vld [vmem:[%s3622_s0 + $0x1d8] sm:$0xff] }
  0x97   :  { %v919_v54 = vmax.f32 %v440_v46, %v870_v47  ;;  %v2767_v46 = vld [vmem:[%s3622_s0 + $0x29c] sm:$0xff] }
  0x99   :  { %v1225_v48 = vpop.f32.mrf.mxu2  ;;  %v1655_v49 = vpop.f32.mrf.mxu3 }
  0x9a   :  { %v1226_v50 = vadd.f32 %v2949_v37, %v1225_v48  ;;  %v1656_v51 = vadd.f32 %v2949_v37, %v1655_v49  ;;  %v318_v52 = vpop.f32.mrf.mxu0  ;;  %v748_v53 = vpop.f32.mrf.mxu1 }
  0x9b   :  { %v319_v57 = vadd.f32 %v2949_v37, %v318_v52  ;;  %v749_v59 = vadd.f32 %v2949_v37, %v748_v53 }
  0x9c   :  { %v1349_v55 = vmax.f32 %v1226_v50, 0.0  ;;  %v1779_v56 = vmax.f32 %v1656_v51, 0.0 }
  0x9d   :  { %v441_v61 = vmax.f32 %v319_v57, 0.0  ;;  %v871_v3 = vmax.f32 %v749_v59, 0.0 }
  0x9e   :  { %v1828_v58 = vmax.f32 %v1349_v55, %v1779_v56 }
  0x9f   :  { %v920_v14 = vmax.f32 %v441_v61, %v871_v3 }
  0xa0   :  { %v1877_v60 = vmax.f32 %v919_v54, %v1828_v58 }
  0xa1   :  { %v1227_v62 = vpop.f32.mrf.mxu2  ;;  %v1657_v63 = vpop.f32.mrf.mxu3 }
  0xa2   :  { %v1926_v2 = vpack.c.bf16 %v1877_v60, %v1877_v60  ;;  %v1228_v4 = vadd.f32 %v2949_v37, %v1227_v62  ;;  %v1658_v5 = vadd.f32 %v2949_v37, %v1657_v63  ;;  %v321_v6 = vpop.f32.mrf.mxu0  ;;  %v751_v7 = vpop.f32.mrf.mxu1 }
  0xa3   :  { %v322_v12 = vadd.f32 %v2949_v37, %v321_v6  ;;  %v752_v13 = vadd.f32 %v2949_v37, %v751_v7 }
  0xa4   :  { %1976 = vst.msk [vmem:[%s3623_s3] sm:$0xf] %vm1975_vm1, %v1926_v2  ;;  %v1350_v10 = vmax.f32 %v1228_v4, 0.0  ;;  %v1780_v11 = vmax.f32 %v1658_v5, 0.0 }
  0xa5   :  { %2154 = vmatmul.msk.bf16.gmra.mxu0 %vm231_vm0, %v2694_v0  ;;  %2324 = vmatmul.msk.bf16.gmra.mxu1 %vm231_vm0, %v2718_v1  ;;  %v442_v17 = vmax.f32 %v322_v12, 0.0  ;;  %v872_v18 = vmax.f32 %v752_v13, 0.0 }
  0xa6   :  { %v1829_v15 = vmax.f32 %v1350_v10, %v1780_v11  ;;  %2494 = vmatmul.msk.bf16.gmra.mxu2 %vm231_vm0, %v2742_v8  ;;  %2664 = vmatmul.msk.bf16.gmra.mxu3 %vm231_vm0, %v2766_v9  ;;  %v2696_v9 = vld [vmem:[%s3622_s0 + $0x58] sm:$0xff] }
  0xa7   :  { %v921_v26 = vmax.f32 %v442_v17, %v872_v18  ;;  %v2720_v10 = vld [vmem:[%s3622_s0 + $0x11c] sm:$0xff]  ;;  %v2768_v18 = vld [vmem:[%s3622_s0 + $0x2a4] sm:$0xff] }
  0xa8   :  { %v1878_v16 = vmax.f32 %v920_v14, %v1829_v15  ;;  %v2744_v17 = vld [vmem:[%s3622_s0 + $0x1e0] sm:$0xff] }
  0xa9   :  { %v1230_v19 = vpop.f32.mrf.mxu2  ;;  %v1660_v20 = vpop.f32.mrf.mxu3 }
  0xaa   :  { %v1927_v21 = vpack.c.bf16 %v1878_v16, %v1878_v16  ;;  %v1231_v22 = vadd.f32 %v2949_v37, %v1230_v19  ;;  %v1661_v23 = vadd.f32 %v2949_v37, %v1660_v20  ;;  %v323_v24 = vpop.f32.mrf.mxu0  ;;  %v753_v25 = vpop.f32.mrf.mxu1 }
  0xab   :  { %v324_v29 = vadd.f32 %v2949_v37, %v323_v24  ;;  %v754_v31 = vadd.f32 %v2949_v37, %v753_v25 }
  0xac   :  { %1977 = vst.msk [vmem:[%s3623_s3 + $0x4] sm:$0xf] %vm1975_vm1, %v1927_v21  ;;  %v1351_v27 = vmax.f32 %v1231_v22, 0.0  ;;  %v1781_v28 = vmax.f32 %v1661_v23, 0.0 }
  0xad   :  { %v443_v33 = vmax.f32 %v324_v29, 0.0  ;;  %v873_v40 = vmax.f32 %v754_v31, 0.0 }
  0xae   :  { %v1830_v30 = vmax.f32 %v1351_v27, %v1781_v28 }
  0xaf   :  { %v922_v51 = vmax.f32 %v443_v33, %v873_v40 }
  0xb0   :  { %v1879_v32 = vmax.f32 %v921_v26, %v1830_v30 }
  0xb1   :  { %v1232_v34 = vpop.f32.mrf.mxu2  ;;  %v1662_v35 = vpop.f32.mrf.mxu3 }
  0xb2   :  { %v1928_v39 = vpack.c.bf16 %v1879_v32, %v1879_v32  ;;  %v1233_v41 = vadd.f32 %v2949_v37, %v1232_v34  ;;  %v1663_v42 = vadd.f32 %v2949_v37, %v1662_v35  ;;  %v326_v43 = vpop.f32.mrf.mxu0  ;;  %v756_v44 = vpop.f32.mrf.mxu1 }
  0xb3   :  { %v327_v49 = vadd.f32 %v2949_v37, %v326_v43  ;;  %v757_v50 = vadd.f32 %v2949_v37, %v756_v44 }
  0xb4   :  { %1978 = vst.msk [vmem:[%s3623_s3 + $0x8] sm:$0xf] %vm1975_vm1, %v1928_v39  ;;  %v1352_v47 = vmax.f32 %v1233_v41, 0.0  ;;  %v1782_v48 = vmax.f32 %v1663_v42, 0.0 }
  0xb5   :  { %2155 = vmatmul.msk.bf16.gmra.mxu0 %vm231_vm0, %v2695_v36  ;;  %2325 = vmatmul.msk.bf16.gmra.mxu1 %vm231_vm0, %v2719_v38  ;;  %v444_v54 = vmax.f32 %v327_v49, 0.0  ;;  %v874_v55 = vmax.f32 %v757_v50, 0.0 }
  0xb6   :  { %v1831_v52 = vmax.f32 %v1352_v47, %v1782_v48  ;;  %2495 = vmatmul.msk.bf16.gmra.mxu2 %vm231_vm0, %v2743_v45  ;;  %2665 = vmatmul.msk.bf16.gmra.mxu3 %vm231_vm0, %v2767_v46  ;;  %v2697_v46 = vld [vmem:[%s3622_s0 + $0x60] sm:$0xff] }
  0xb7   :  { %v923_v63 = vmax.f32 %v444_v54, %v874_v55  ;;  %v2721_v47 = vld [vmem:[%s3622_s0 + $0x124] sm:$0xff]  ;;  %v2769_v55 = vld [vmem:[%s3622_s0 + $0x2ac] sm:$0xff] }
  0xb8   :  { %v1880_v53 = vmax.f32 %v922_v51, %v1831_v52  ;;  %v2745_v54 = vld [vmem:[%s3622_s0 + $0x1e8] sm:$0xff] }
  0xb9   :  { %v1235_v56 = vpop.f32.mrf.mxu2  ;;  %v1665_v57 = vpop.f32.mrf.mxu3 }
  0xba   :  { %v1929_v58 = vpack.c.bf16 %v1880_v53, %v1880_v53  ;;  %v1236_v59 = vadd.f32 %v2949_v37, %v1235_v56  ;;  %v1666_v60 = vadd.f32 %v2949_v37, %v1665_v57  ;;  %v328_v61 = vpop.f32.mrf.mxu0  ;;  %v758_v62 = vpop.f32.mrf.mxu1 }
  0xbb   :  { %v329_v2 = vadd.f32 %v2949_v37, %v328_v61  ;;  %v759_v4 = vadd.f32 %v2949_v37, %v758_v62 }
  0xbc   :  { %1979 = vst.msk [vmem:[%s3623_s3 + $0xc] sm:$0xf] %vm1975_vm1, %v1929_v58  ;;  %v1353_v0 = vmax.f32 %v1236_v59, 0.0  ;;  %v1783_v1 = vmax.f32 %v1666_v60, 0.0 }
  0xbd   :  { %v445_v6 = vmax.f32 %v329_v2, 0.0  ;;  %v875_v12 = vmax.f32 %v759_v4, 0.0 }
  0xbe   :  { %v1832_v3 = vmax.f32 %v1353_v0, %v1783_v1 }
  0xbf   :  { %v924_v23 = vmax.f32 %v445_v6, %v875_v12 }
  0xc0   :  { %v1881_v5 = vmax.f32 %v923_v63, %v1832_v3 }
  0xc1   :  { %v1237_v7 = vpop.f32.mrf.mxu2  ;;  %v1667_v8 = vpop.f32.mrf.mxu3 }
  0xc2   :  { %v1930_v11 = vpack.c.bf16 %v1881_v5, %v1881_v5  ;;  %v1238_v13 = vadd.f32 %v2949_v37, %v1237_v7  ;;  %v1668_v14 = vadd.f32 %v2949_v37, %v1667_v8  ;;  %v331_v15 = vpop.f32.mrf.mxu0  ;;  %v761_v16 = vpop.f32.mrf.mxu1 }
  0xc3   :  { %v332_v21 = vadd.f32 %v2949_v37, %v331_v15  ;;  %v762_v22 = vadd.f32 %v2949_v37, %v761_v16 }
  0xc4   :  { %1980 = vst.msk [vmem:[%s3623_s3 + $0x10] sm:$0xf] %vm1975_vm1, %v1930_v11  ;;  %v1354_v19 = vmax.f32 %v1238_v13, 0.0  ;;  %v1784_v20 = vmax.f32 %v1668_v14, 0.0 }
  0xc5   :  { %2156 = vmatmul.msk.bf16.gmra.mxu0 %vm231_vm0, %v2696_v9  ;;  %2326 = vmatmul.msk.bf16.gmra.mxu1 %vm231_vm0, %v2720_v10  ;;  %v446_v26 = vmax.f32 %v332_v21, 0.0  ;;  %v876_v27 = vmax.f32 %v762_v22, 0.0 }
  0xc6   :  { %v1833_v24 = vmax.f32 %v1354_v19, %v1784_v20  ;;  %2496 = vmatmul.msk.bf16.gmra.mxu2 %vm231_vm0, %v2744_v17  ;;  %2666 = vmatmul.msk.bf16.gmra.mxu3 %vm231_vm0, %v2768_v18  ;;  %v2698_v18 = vld [vmem:[%s3622_s0 + $0x68] sm:$0xff] }
  0xc7   :  { %v925_v35 = vmax.f32 %v446_v26, %v876_v27  ;;  %v2722_v19 = vld [vmem:[%s3622_s0 + $0x12c] sm:$0xff]  ;;  %v2770_v27 = vld [vmem:[%s3622_s0 + $0x2b4] sm:$0xff] }
  0xc8   :  { %v1882_v25 = vmax.f32 %v924_v23, %v1833_v24  ;;  %v2746_v26 = vld [vmem:[%s3622_s0 + $0x1f0] sm:$0xff] }
  0xc9   :  { %v1240_v28 = vpop.f32.mrf.mxu2  ;;  %v1670_v29 = vpop.f32.mrf.mxu3 }
  0xca   :  { %v1931_v30 = vpack.c.bf16 %v1882_v25, %v1882_v25  ;;  %v1241_v31 = vadd.f32 %v2949_v37, %v1240_v28  ;;  %v1671_v32 = vadd.f32 %v2949_v37, %v1670_v29  ;;  %v333_v33 = vpop.f32.mrf.mxu0  ;;  %v763_v34 = vpop.f32.mrf.mxu1 }
  0xcb   :  { %v334_v39 = vadd.f32 %v2949_v37, %v333_v33  ;;  %v764_v41 = vadd.f32 %v2949_v37, %v763_v34 }
  0xcc   :  { %1981 = vst.msk [vmem:[%s3623_s3 + $0x14] sm:$0xf] %vm1975_vm1, %v1931_v30  ;;  %v1355_v36 = vmax.f32 %v1241_v31, 0.0  ;;  %v1785_v38 = vmax.f32 %v1671_v32, 0.0 }
  0xcd   :  { %v447_v43 = vmax.f32 %v334_v39, 0.0  ;;  %v877_v49 = vmax.f32 %v764_v41, 0.0 }
  0xce   :  { %v1834_v40 = vmax.f32 %v1355_v36, %v1785_v38 }
  0xcf   :  { %v926_v60 = vmax.f32 %v447_v43, %v877_v49 }
  0xd0   :  { %v1883_v42 = vmax.f32 %v925_v35, %v1834_v40 }
  0xd1   :  { %v1242_v44 = vpop.f32.mrf.mxu2  ;;  %v1672_v45 = vpop.f32.mrf.mxu3 }
  0xd2   :  { %v1932_v48 = vpack.c.bf16 %v1883_v42, %v1883_v42  ;;  %v1243_v50 = vadd.f32 %v2949_v37, %v1242_v44  ;;  %v1673_v51 = vadd.f32 %v2949_v37, %v1672_v45  ;;  %v336_v52 = vpop.f32.mrf.mxu0  ;;  %v766_v53 = vpop.f32.mrf.mxu1 }
  0xd3   :  { %v337_v58 = vadd.f32 %v2949_v37, %v336_v52  ;;  %v767_v59 = vadd.f32 %v2949_v37, %v766_v53 }
  0xd4   :  { %1982 = vst.msk [vmem:[%s3623_s3 + $0x18] sm:$0xf] %vm1975_vm1, %v1932_v48  ;;  %v1356_v56 = vmax.f32 %v1243_v50, 0.0  ;;  %v1786_v57 = vmax.f32 %v1673_v51, 0.0 }
  0xd5   :  { %2157 = vmatmul.msk.bf16.gmra.mxu0 %vm231_vm0, %v2697_v46  ;;  %2327 = vmatmul.msk.bf16.gmra.mxu1 %vm231_vm0, %v2721_v47  ;;  %v448_v63 = vmax.f32 %v337_v58, 0.0  ;;  %v878_v0 = vmax.f32 %v767_v59, 0.0 }
  0xd6   :  { %v1835_v61 = vmax.f32 %v1356_v56, %v1786_v57  ;;  %2497 = vmatmul.msk.bf16.gmra.mxu2 %vm231_vm0, %v2745_v54  ;;  %2667 = vmatmul.msk.bf16.gmra.mxu3 %vm231_vm0, %v2769_v55  ;;  %v2699_v55 = vld [vmem:[%s3622_s0 + $0x70] sm:$0xff] }
  0xd7   :  { %v927_v8 = vmax.f32 %v448_v63, %v878_v0  ;;  %v2723_v56 = vld [vmem:[%s3622_s0 + $0x134] sm:$0xff]  ;;  %v2771_v0 = vld [vmem:[%s3622_s0 + $0x2bc] sm:$0xff] }
  0xd8   :  { %v1884_v62 = vmax.f32 %v926_v60, %v1835_v61  ;;  %v2747_v63 = vld [vmem:[%s3622_s0 + $0x1f8] sm:$0xff] }
  0xd9   :  { %v1245_v1 = vpop.f32.mrf.mxu2  ;;  %v1675_v2 = vpop.f32.mrf.mxu3 }
  0xda   :  { %v1933_v3 = vpack.c.bf16 %v1884_v62, %v1884_v62  ;;  %v1246_v4 = vadd.f32 %v2949_v37, %v1245_v1  ;;  %v1676_v5 = vadd.f32 %v2949_v37, %v1675_v2  ;;  %v338_v6 = vpop.f32.mrf.mxu0  ;;  %v768_v7 = vpop.f32.mrf.mxu1 }
  0xdb   :  { %v339_v11 = vadd.f32 %v2949_v37, %v338_v6  ;;  %v769_v13 = vadd.f32 %v2949_v37, %v768_v7 }
  0xdc   :  { %1983 = vst.msk [vmem:[%s3623_s3 + $0x1c] sm:$0xf] %vm1975_vm1, %v1933_v3  ;;  %v1357_v9 = vmax.f32 %v1246_v4, 0.0  ;;  %v1787_v10 = vmax.f32 %v1676_v5, 0.0 }
  0xdd   :  { %v449_v15 = vmax.f32 %v339_v11, 0.0  ;;  %v879_v21 = vmax.f32 %v769_v13, 0.0 }
  0xde   :  { %v1836_v12 = vmax.f32 %v1357_v9, %v1787_v10 }
  0xdf   :  { %v928_v32 = vmax.f32 %v449_v15, %v879_v21 }
  0xe0   :  { %v1885_v14 = vmax.f32 %v927_v8, %v1836_v12 }
  0xe1   :  { %v1247_v16 = vpop.f32.mrf.mxu2  ;;  %v1677_v17 = vpop.f32.mrf.mxu3 }
  0xe2   :  { %v1934_v20 = vpack.c.bf16 %v1885_v14, %v1885_v14  ;;  %v1248_v22 = vadd.f32 %v2949_v37, %v1247_v16  ;;  %v1678_v23 = vadd.f32 %v2949_v37, %v1677_v17  ;;  %v341_v24 = vpop.f32.mrf.mxu0  ;;  %v771_v25 = vpop.f32.mrf.mxu1 }
  0xe3   :  { %v342_v30 = vadd.f32 %v2949_v37, %v341_v24  ;;  %v772_v31 = vadd.f32 %v2949_v37, %v771_v25 }
  0xe4   :  { %1984 = vst.msk [vmem:[%s3623_s3 + $0x20] sm:$0xf] %vm1975_vm1, %v1934_v20  ;;  %v1358_v28 = vmax.f32 %v1248_v22, 0.0  ;;  %v1788_v29 = vmax.f32 %v1678_v23, 0.0 }
  0xe5   :  { %2158 = vmatmul.msk.bf16.gmra.mxu0 %vm231_vm0, %v2698_v18  ;;  %2328 = vmatmul.msk.bf16.gmra.mxu1 %vm231_vm0, %v2722_v19  ;;  %v450_v35 = vmax.f32 %v342_v30, 0.0  ;;  %v880_v36 = vmax.f32 %v772_v31, 0.0 }
  0xe6   :  { %v1837_v33 = vmax.f32 %v1358_v28, %v1788_v29  ;;  %2498 = vmatmul.msk.bf16.gmra.mxu2 %vm231_vm0, %v2746_v26  ;;  %2668 = vmatmul.msk.bf16.gmra.mxu3 %vm231_vm0, %v2770_v27  ;;  %v2700_v27 = vld [vmem:[%s3622_s0 + $0x78] sm:$0xff] }
  0xe7   :  { %v929_v45 = vmax.f32 %v450_v35, %v880_v36  ;;  %v2724_v28 = vld [vmem:[%s3622_s0 + $0x13c] sm:$0xff]  ;;  %v2772_v36 = vld [vmem:[%s3622_s0 + $0x2c4] sm:$0xff] }
  0xe8   :  { %v1886_v34 = vmax.f32 %v928_v32, %v1837_v33  ;;  %v2748_v35 = vld [vmem:[%s3622_s0 + $0x200] sm:$0xff] }
  0xe9   :  { %v1250_v38 = vpop.f32.mrf.mxu2  ;;  %v1680_v39 = vpop.f32.mrf.mxu3 }
  0xea   :  { %v1935_v40 = vpack.c.bf16 %v1886_v34, %v1886_v34  ;;  %v1251_v41 = vadd.f32 %v2949_v37, %v1250_v38  ;;  %v1681_v42 = vadd.f32 %v2949_v37, %v1680_v39  ;;  %v343_v43 = vpop.f32.mrf.mxu0  ;;  %v773_v44 = vpop.f32.mrf.mxu1 }
  0xeb   :  { %v344_v48 = vadd.f32 %v2949_v37, %v343_v43  ;;  %v774_v50 = vadd.f32 %v2949_v37, %v773_v44 }
  0xec   :  { %1985 = vst.msk [vmem:[%s3623_s3 + $0x24] sm:$0xf] %vm1975_vm1, %v1935_v40  ;;  %v1359_v46 = vmax.f32 %v1251_v41, 0.0  ;;  %v1789_v47 = vmax.f32 %v1681_v42, 0.0 }
  0xed   :  { %v451_v52 = vmax.f32 %v344_v48, 0.0  ;;  %v881_v58 = vmax.f32 %v774_v50, 0.0 }
  0xee   :  { %v1838_v49 = vmax.f32 %v1359_v46, %v1789_v47 }
  0xef   :  { %v930_v5 = vmax.f32 %v451_v52, %v881_v58 }
  0xf0   :  { %v1887_v51 = vmax.f32 %v929_v45, %v1838_v49 }
  0xf1   :  { %v1252_v53 = vpop.f32.mrf.mxu2  ;;  %v1682_v54 = vpop.f32.mrf.mxu3 }
  0xf2   :  { %v1936_v57 = vpack.c.bf16 %v1887_v51, %v1887_v51  ;;  %v1253_v59 = vadd.f32 %v2949_v37, %v1252_v53  ;;  %v1683_v60 = vadd.f32 %v2949_v37, %v1682_v54  ;;  %v346_v61 = vpop.f32.mrf.mxu0  ;;  %v776_v62 = vpop.f32.mrf.mxu1 }
  0xf3   :  { %v347_v3 = vadd.f32 %v2949_v37, %v346_v61  ;;  %v777_v4 = vadd.f32 %v2949_v37, %v776_v62 }
  0xf4   :  { %1986 = vst.msk [vmem:[%s3623_s3 + $0x28] sm:$0xf] %vm1975_vm1, %v1936_v57  ;;  %v1360_v1 = vmax.f32 %v1253_v59, 0.0  ;;  %v1790_v2 = vmax.f32 %v1683_v60, 0.0 }
  0xf5   :  { %2159 = vmatmul.msk.bf16.gmra.mxu0 %vm231_vm0, %v2699_v55  ;;  %2329 = vmatmul.msk.bf16.gmra.mxu1 %vm231_vm0, %v2723_v56  ;;  %v452_v8 = vmax.f32 %v347_v3, 0.0  ;;  %v882_v9 = vmax.f32 %v777_v4, 0.0 }
  0xf6   :  { %v1839_v6 = vmax.f32 %v1360_v1, %v1790_v2  ;;  %2499 = vmatmul.msk.bf16.gmra.mxu2 %vm231_vm0, %v2747_v63  ;;  %2669 = vmatmul.msk.bf16.gmra.mxu3 %vm231_vm0, %v2771_v0  ;;  %v2701_v0 = vld [vmem:[%s3622_s0 + $0x80] sm:$0xff] }
  0xf7   :  { %v931_v17 = vmax.f32 %v452_v8, %v882_v9  ;;  %v2725_v1 = vld [vmem:[%s3622_s0 + $0x144] sm:$0xff]  ;;  %v2773_v9 = vld [vmem:[%s3622_s0 + $0x2cc] sm:$0xff] }
  0xf8   :  { %v1888_v7 = vmax.f32 %v930_v5, %v1839_v6  ;;  %v2749_v8 = vld [vmem:[%s3622_s0 + $0x208] sm:$0xff] }
  0xf9   :  { %v1255_v10 = vpop.f32.mrf.mxu2  ;;  %v1685_v11 = vpop.f32.mrf.mxu3 }
  0xfa   :  { %v1937_v12 = vpack.c.bf16 %v1888_v7, %v1888_v7  ;;  %v1256_v13 = vadd.f32 %v2949_v37, %v1255_v10  ;;  %v1686_v14 = vadd.f32 %v2949_v37, %v1685_v11  ;;  %v348_v15 = vpop.f32.mrf.mxu0  ;;  %v778_v16 = vpop.f32.mrf.mxu1 }
  0xfb   :  { %v349_v20 = vadd.f32 %v2949_v37, %v348_v15  ;;  %v779_v22 = vadd.f32 %v2949_v37, %v778_v16 }
  0xfc   :  { %1987 = vst.msk [vmem:[%s3623_s3 + $0x2c] sm:$0xf] %vm1975_vm1, %v1937_v12  ;;  %v1361_v18 = vmax.f32 %v1256_v13, 0.0  ;;  %v1791_v19 = vmax.f32 %v1686_v14, 0.0 }
  0xfd   :  { %v453_v24 = vmax.f32 %v349_v20, 0.0  ;;  %v883_v30 = vmax.f32 %v779_v22, 0.0 }
  0xfe   :  { %v1840_v21 = vmax.f32 %v1361_v18, %v1791_v19 }
  0xff   :  { %v932_v42 = vmax.f32 %v453_v24, %v883_v30 }
 0x100   :  { %v1889_v23 = vmax.f32 %v931_v17, %v1840_v21 }
 0x101   :  { %v1257_v25 = vpop.f32.mrf.mxu2  ;;  %v1687_v26 = vpop.f32.mrf.mxu3 }
 0x102   :  { %v1938_v29 = vpack.c.bf16 %v1889_v23, %v1889_v23  ;;  %v1258_v31 = vadd.f32 %v2949_v37, %v1257_v25  ;;  %v1688_v32 = vadd.f32 %v2949_v37, %v1687_v26  ;;  %v351_v33 = vpop.f32.mrf.mxu0  ;;  %v781_v34 = vpop.f32.mrf.mxu1 }
 0x103   :  { %v352_v40 = vadd.f32 %v2949_v37, %v351_v33  ;;  %v782_v41 = vadd.f32 %v2949_v37, %v781_v34 }
 0x104   :  { %1988 = vst.msk [vmem:[%s3623_s3 + $0x30] sm:$0xf] %vm1975_vm1, %v1938_v29  ;;  %v1362_v38 = vmax.f32 %v1258_v31, 0.0  ;;  %v1792_v39 = vmax.f32 %v1688_v32, 0.0 }
 0x105   :  { %2160 = vmatmul.msk.bf16.gmra.mxu0 %vm231_vm0, %v2700_v27  ;;  %2330 = vmatmul.msk.bf16.gmra.mxu1 %vm231_vm0, %v2724_v28  ;;  %v454_v45 = vmax.f32 %v352_v40, 0.0  ;;  %v884_v46 = vmax.f32 %v782_v41, 0.0 }
 0x106   :  { %v1841_v43 = vmax.f32 %v1362_v38, %v1792_v39  ;;  %2500 = vmatmul.msk.bf16.gmra.mxu2 %vm231_vm0, %v2748_v35  ;;  %2670 = vmatmul.msk.bf16.gmra.mxu3 %vm231_vm0, %v2772_v36  ;;  %v2702_v36 = vld [vmem:[%s3622_s0 + $0x88] sm:$0xff] }
 0x107   :  { %v933_v54 = vmax.f32 %v454_v45, %v884_v46  ;;  %v2726_v38 = vld [vmem:[%s3622_s0 + $0x14c] sm:$0xff]  ;;  %v2774_v46 = vld [vmem:[%s3622_s0 + $0x2d4] sm:$0xff] }
 0x108   :  { %v1890_v44 = vmax.f32 %v932_v42, %v1841_v43  ;;  %v2750_v45 = vld [vmem:[%s3622_s0 + $0x210] sm:$0xff] }
 0x109   :  { %v1260_v47 = vpop.f32.mrf.mxu2  ;;  %v1690_v48 = vpop.f32.mrf.mxu3 }
 0x10a   :  { %v1939_v49 = vpack.c.bf16 %v1890_v44, %v1890_v44  ;;  %v1261_v50 = vadd.f32 %v2949_v37, %v1260_v47  ;;  %v1691_v51 = vadd.f32 %v2949_v37, %v1690_v48  ;;  %v353_v52 = vpop.f32.mrf.mxu0  ;;  %v783_v53 = vpop.f32.mrf.mxu1 }
 0x10b   :  { %v354_v57 = vadd.f32 %v2949_v37, %v353_v52  ;;  %v784_v59 = vadd.f32 %v2949_v37, %v783_v53 }
 0x10c   :  { %1989 = vst.msk [vmem:[%s3623_s3 + $0x34] sm:$0xf] %vm1975_vm1, %v1939_v49  ;;  %v1363_v55 = vmax.f32 %v1261_v50, 0.0  ;;  %v1793_v56 = vmax.f32 %v1691_v51, 0.0 }
 0x10d   :  { %v455_v61 = vmax.f32 %v354_v57, 0.0  ;;  %v885_v3 = vmax.f32 %v784_v59, 0.0 }
 0x10e   :  { %v1842_v58 = vmax.f32 %v1363_v55, %v1793_v56 }
 0x10f   :  { %v934_v14 = vmax.f32 %v455_v61, %v885_v3 }
 0x110   :  { %v1891_v60 = vmax.f32 %v933_v54, %v1842_v58 }
 0x111   :  { %v1262_v62 = vpop.f32.mrf.mxu2  ;;  %v1692_v63 = vpop.f32.mrf.mxu3 }
 0x112   :  { %v1940_v2 = vpack.c.bf16 %v1891_v60, %v1891_v60  ;;  %v1263_v4 = vadd.f32 %v2949_v37, %v1262_v62  ;;  %v1693_v5 = vadd.f32 %v2949_v37, %v1692_v63  ;;  %v356_v6 = vpop.f32.mrf.mxu0  ;;  %v786_v7 = vpop.f32.mrf.mxu1 }
 0x113   :  { %v357_v12 = vadd.f32 %v2949_v37, %v356_v6  ;;  %v787_v13 = vadd.f32 %v2949_v37, %v786_v7 }
 0x114   :  { %1990 = vst.msk [vmem:[%s3623_s3 + $0x38] sm:$0xf] %vm1975_vm1, %v1940_v2  ;;  %v1364_v10 = vmax.f32 %v1263_v4, 0.0  ;;  %v1794_v11 = vmax.f32 %v1693_v5, 0.0 }
 0x115   :  { %2161 = vmatmul.msk.bf16.gmra.mxu0 %vm231_vm0, %v2701_v0  ;;  %2331 = vmatmul.msk.bf16.gmra.mxu1 %vm231_vm0, %v2725_v1  ;;  %v456_v17 = vmax.f32 %v357_v12, 0.0  ;;  %v886_v18 = vmax.f32 %v787_v13, 0.0 }
 0x116   :  { %v1843_v15 = vmax.f32 %v1364_v10, %v1794_v11  ;;  %2501 = vmatmul.msk.bf16.gmra.mxu2 %vm231_vm0, %v2749_v8  ;;  %2671 = vmatmul.msk.bf16.gmra.mxu3 %vm231_vm0, %v2773_v9  ;;  %v2703_v9 = vld [vmem:[%s3622_s0 + $0x90] sm:$0xff] }
 0x117   :  { %v935_v26 = vmax.f32 %v456_v17, %v886_v18  ;;  %v2727_v10 = vld [vmem:[%s3622_s0 + $0x154] sm:$0xff]  ;;  %v2775_v18 = vld [vmem:[%s3622_s0 + $0x2dc] sm:$0xff] }
 0x118   :  { %v1892_v16 = vmax.f32 %v934_v14, %v1843_v15  ;;  %v2751_v17 = vld [vmem:[%s3622_s0 + $0x218] sm:$0xff] }
 0x119   :  { %v1265_v19 = vpop.f32.mrf.mxu2  ;;  %v1695_v20 = vpop.f32.mrf.mxu3 }
 0x11a   :  { %v1941_v21 = vpack.c.bf16 %v1892_v16, %v1892_v16  ;;  %v1266_v22 = vadd.f32 %v2949_v37, %v1265_v19  ;;  %v1696_v23 = vadd.f32 %v2949_v37, %v1695_v20  ;;  %v358_v24 = vpop.f32.mrf.mxu0  ;;  %v788_v25 = vpop.f32.mrf.mxu1 }
 0x11b   :  { %v359_v29 = vadd.f32 %v2949_v37, %v358_v24  ;;  %v789_v31 = vadd.f32 %v2949_v37, %v788_v25 }
 0x11c   :  { %1991 = vst.msk [vmem:[%s3623_s3 + $0x3c] sm:$0xf] %vm1975_vm1, %v1941_v21  ;;  %v1365_v27 = vmax.f32 %v1266_v22, 0.0  ;;  %v1795_v28 = vmax.f32 %v1696_v23, 0.0 }
 0x11d   :  { %v457_v33 = vmax.f32 %v359_v29, 0.0  ;;  %v887_v40 = vmax.f32 %v789_v31, 0.0 }
 0x11e   :  { %v1844_v30 = vmax.f32 %v1365_v27, %v1795_v28 }
 0x11f   :  { %v936_v51 = vmax.f32 %v457_v33, %v887_v40 }
 0x120   :  { %v1893_v32 = vmax.f32 %v935_v26, %v1844_v30 }
 0x121   :  { %v1267_v34 = vpop.f32.mrf.mxu2  ;;  %v1697_v35 = vpop.f32.mrf.mxu3 }
 0x122   :  { %v1942_v39 = vpack.c.bf16 %v1893_v32, %v1893_v32  ;;  %v1268_v41 = vadd.f32 %v2949_v37, %v1267_v34  ;;  %v1698_v42 = vadd.f32 %v2949_v37, %v1697_v35  ;;  %v361_v43 = vpop.f32.mrf.mxu0  ;;  %v791_v44 = vpop.f32.mrf.mxu1 }
 0x123   :  { %v362_v49 = vadd.f32 %v2949_v37, %v361_v43  ;;  %v792_v50 = vadd.f32 %v2949_v37, %v791_v44 }
 0x124   :  { %1992 = vst.msk [vmem:[%s3623_s3 + $0x40] sm:$0xf] %vm1975_vm1, %v1942_v39  ;;  %v1366_v47 = vmax.f32 %v1268_v41, 0.0  ;;  %v1796_v48 = vmax.f32 %v1698_v42, 0.0 }
 0x125   :  { %2162 = vmatmul.msk.bf16.gmra.mxu0 %vm231_vm0, %v2702_v36  ;;  %2332 = vmatmul.msk.bf16.gmra.mxu1 %vm231_vm0, %v2726_v38  ;;  %v458_v54 = vmax.f32 %v362_v49, 0.0  ;;  %v888_v55 = vmax.f32 %v792_v50, 0.0 }
 0x126   :  { %v1845_v52 = vmax.f32 %v1366_v47, %v1796_v48  ;;  %2502 = vmatmul.msk.bf16.gmra.mxu2 %vm231_vm0, %v2750_v45  ;;  %2672 = vmatmul.msk.bf16.gmra.mxu3 %vm231_vm0, %v2774_v46  ;;  %v2704_v46 = vld [vmem:[%s3622_s0 + $0x98] sm:$0xff] }
 0x127   :  { %v937_v63 = vmax.f32 %v458_v54, %v888_v55  ;;  %v2728_v47 = vld [vmem:[%s3622_s0 + $0x15c] sm:$0xff]  ;;  %v2776_v55 = vld [vmem:[%s3622_s0 + $0x2e4] sm:$0xff] }
 0x128   :  { %v1894_v53 = vmax.f32 %v936_v51, %v1845_v52  ;;  %v2752_v54 = vld [vmem:[%s3622_s0 + $0x220] sm:$0xff] }
 0x129   :  { %v1270_v56 = vpop.f32.mrf.mxu2  ;;  %v1700_v57 = vpop.f32.mrf.mxu3 }
 0x12a   :  { %v1943_v58 = vpack.c.bf16 %v1894_v53, %v1894_v53  ;;  %v1271_v59 = vadd.f32 %v2949_v37, %v1270_v56  ;;  %v1701_v60 = vadd.f32 %v2949_v37, %v1700_v57  ;;  %v363_v61 = vpop.f32.mrf.mxu0  ;;  %v793_v62 = vpop.f32.mrf.mxu1 }
 0x12b   :  { %v364_v2 = vadd.f32 %v2949_v37, %v363_v61  ;;  %v794_v4 = vadd.f32 %v2949_v37, %v793_v62 }
 0x12c   :  { %1993 = vst.msk [vmem:[%s3623_s3 + $0x44] sm:$0xf] %vm1975_vm1, %v1943_v58  ;;  %v1367_v0 = vmax.f32 %v1271_v59, 0.0  ;;  %v1797_v1 = vmax.f32 %v1701_v60, 0.0 }
 0x12d   :  { %v459_v6 = vmax.f32 %v364_v2, 0.0  ;;  %v889_v12 = vmax.f32 %v794_v4, 0.0 }
 0x12e   :  { %v1846_v3 = vmax.f32 %v1367_v0, %v1797_v1 }
 0x12f   :  { %v938_v23 = vmax.f32 %v459_v6, %v889_v12 }
 0x130   :  { %v1895_v5 = vmax.f32 %v937_v63, %v1846_v3 }
 0x131   :  { %v1272_v7 = vpop.f32.mrf.mxu2  ;;  %v1702_v8 = vpop.f32.mrf.mxu3 }
 0x132   :  { %v1944_v11 = vpack.c.bf16 %v1895_v5, %v1895_v5  ;;  %v1273_v13 = vadd.f32 %v2949_v37, %v1272_v7  ;;  %v1703_v14 = vadd.f32 %v2949_v37, %v1702_v8  ;;  %v366_v15 = vpop.f32.mrf.mxu0  ;;  %v796_v16 = vpop.f32.mrf.mxu1 }
 0x133   :  { %v367_v21 = vadd.f32 %v2949_v37, %v366_v15  ;;  %v797_v22 = vadd.f32 %v2949_v37, %v796_v16 }
 0x134   :  { %1994 = vst.msk [vmem:[%s3623_s3 + $0x48] sm:$0xf] %vm1975_vm1, %v1944_v11  ;;  %v1368_v19 = vmax.f32 %v1273_v13, 0.0  ;;  %v1798_v20 = vmax.f32 %v1703_v14, 0.0 }
 0x135   :  { %2163 = vmatmul.msk.bf16.gmra.mxu0 %vm231_vm0, %v2703_v9  ;;  %2333 = vmatmul.msk.bf16.gmra.mxu1 %vm231_vm0, %v2727_v10  ;;  %v460_v26 = vmax.f32 %v367_v21, 0.0  ;;  %v890_v27 = vmax.f32 %v797_v22, 0.0 }
 0x136   :  { %v1847_v24 = vmax.f32 %v1368_v19, %v1798_v20  ;;  %2503 = vmatmul.msk.bf16.gmra.mxu2 %vm231_vm0, %v2751_v17  ;;  %2673 = vmatmul.msk.bf16.gmra.mxu3 %vm231_vm0, %v2775_v18  ;;  %v2705_v18 = vld [vmem:[%s3622_s0 + $0xa0] sm:$0xff] }
 0x137   :  { %v939_v35 = vmax.f32 %v460_v26, %v890_v27  ;;  %v2729_v19 = vld [vmem:[%s3622_s0 + $0x164] sm:$0xff]  ;;  %v2777_v27 = vld [vmem:[%s3622_s0 + $0x2ec] sm:$0xff] }
 0x138   :  { %v1896_v25 = vmax.f32 %v938_v23, %v1847_v24  ;;  %v2753_v26 = vld [vmem:[%s3622_s0 + $0x228] sm:$0xff] }
 0x139   :  { %v1275_v28 = vpop.f32.mrf.mxu2  ;;  %v1705_v29 = vpop.f32.mrf.mxu3 }
 0x13a   :  { %v1945_v30 = vpack.c.bf16 %v1896_v25, %v1896_v25  ;;  %v1276_v31 = vadd.f32 %v2949_v37, %v1275_v28  ;;  %v1706_v32 = vadd.f32 %v2949_v37, %v1705_v29  ;;  %v368_v33 = vpop.f32.mrf.mxu0  ;;  %v798_v34 = vpop.f32.mrf.mxu1 }
 0x13b   :  { %v369_v39 = vadd.f32 %v2949_v37, %v368_v33  ;;  %v799_v41 = vadd.f32 %v2949_v37, %v798_v34 }
 0x13c   :  { %1995 = vst.msk [vmem:[%s3623_s3 + $0x4c] sm:$0xf] %vm1975_vm1, %v1945_v30  ;;  %v1369_v36 = vmax.f32 %v1276_v31, 0.0  ;;  %v1799_v38 = vmax.f32 %v1706_v32, 0.0 }
 0x13d   :  { %v461_v43 = vmax.f32 %v369_v39, 0.0  ;;  %v891_v49 = vmax.f32 %v799_v41, 0.0 }
 0x13e   :  { %v1848_v40 = vmax.f32 %v1369_v36, %v1799_v38 }
 0x13f   :  { %v940_v60 = vmax.f32 %v461_v43, %v891_v49 }
 0x140   :  { %v1897_v42 = vmax.f32 %v939_v35, %v1848_v40 }
 0x141   :  { %v1277_v44 = vpop.f32.mrf.mxu2  ;;  %v1707_v45 = vpop.f32.mrf.mxu3 }
 0x142   :  { %v1946_v48 = vpack.c.bf16 %v1897_v42, %v1897_v42  ;;  %v1278_v50 = vadd.f32 %v2949_v37, %v1277_v44  ;;  %v1708_v51 = vadd.f32 %v2949_v37, %v1707_v45  ;;  %v371_v52 = vpop.f32.mrf.mxu0  ;;  %v801_v53 = vpop.f32.mrf.mxu1 }
 0x143   :  { %v372_v58 = vadd.f32 %v2949_v37, %v371_v52  ;;  %v802_v59 = vadd.f32 %v2949_v37, %v801_v53 }
 0x144   :  { %1996 = vst.msk [vmem:[%s3623_s3 + $0x50] sm:$0xf] %vm1975_vm1, %v1946_v48  ;;  %v1370_v56 = vmax.f32 %v1278_v50, 0.0  ;;  %v1800_v57 = vmax.f32 %v1708_v51, 0.0 }
 0x145   :  { %2164 = vmatmul.msk.bf16.gmra.mxu0 %vm231_vm0, %v2704_v46  ;;  %2334 = vmatmul.msk.bf16.gmra.mxu1 %vm231_vm0, %v2728_v47  ;;  %v462_v63 = vmax.f32 %v372_v58, 0.0  ;;  %v892_v0 = vmax.f32 %v802_v59, 0.0 }
 0x146   :  { %v1849_v61 = vmax.f32 %v1370_v56, %v1800_v57  ;;  %2504 = vmatmul.msk.bf16.gmra.mxu2 %vm231_vm0, %v2752_v54  ;;  %2674 = vmatmul.msk.bf16.gmra.mxu3 %vm231_vm0, %v2776_v55  ;;  %v2706_v55 = vld [vmem:[%s3622_s0 + $0xa8] sm:$0xff] }
 0x147   :  { %v941_v8 = vmax.f32 %v462_v63, %v892_v0  ;;  %v2730_v56 = vld [vmem:[%s3622_s0 + $0x16c] sm:$0xff]  ;;  %v2778_v0 = vld [vmem:[%s3622_s0 + $0x2f4] sm:$0xff] }
 0x148   :  { %v1898_v62 = vmax.f32 %v940_v60, %v1849_v61  ;;  %v2754_v63 = vld [vmem:[%s3622_s0 + $0x230] sm:$0xff] }
 0x149   :  { %v1280_v1 = vpop.f32.mrf.mxu2  ;;  %v1710_v2 = vpop.f32.mrf.mxu3 }
 0x14a   :  { %v1947_v3 = vpack.c.bf16 %v1898_v62, %v1898_v62  ;;  %v1281_v4 = vadd.f32 %v2949_v37, %v1280_v1  ;;  %v1711_v5 = vadd.f32 %v2949_v37, %v1710_v2  ;;  %v373_v6 = vpop.f32.mrf.mxu0  ;;  %v803_v7 = vpop.f32.mrf.mxu1 }
 0x14b   :  { %v374_v11 = vadd.f32 %v2949_v37, %v373_v6  ;;  %v804_v13 = vadd.f32 %v2949_v37, %v803_v7 }
 0x14c   :  { %1997 = vst.msk [vmem:[%s3623_s3 + $0x54] sm:$0xf] %vm1975_vm1, %v1947_v3  ;;  %v1371_v9 = vmax.f32 %v1281_v4, 0.0  ;;  %v1801_v10 = vmax.f32 %v1711_v5, 0.0 }
 0x14d   :  { %v463_v15 = vmax.f32 %v374_v11, 0.0  ;;  %v893_v21 = vmax.f32 %v804_v13, 0.0 }
 0x14e   :  { %v1850_v12 = vmax.f32 %v1371_v9, %v1801_v10 }
 0x14f   :  { %v942_v32 = vmax.f32 %v463_v15, %v893_v21 }
 0x150   :  { %v1899_v14 = vmax.f32 %v941_v8, %v1850_v12 }
 0x151   :  { %v1282_v16 = vpop.f32.mrf.mxu2  ;;  %v1712_v17 = vpop.f32.mrf.mxu3 }
 0x152   :  { %v1948_v20 = vpack.c.bf16 %v1899_v14, %v1899_v14  ;;  %v1283_v22 = vadd.f32 %v2949_v37, %v1282_v16  ;;  %v1713_v23 = vadd.f32 %v2949_v37, %v1712_v17  ;;  %v376_v24 = vpop.f32.mrf.mxu0  ;;  %v806_v25 = vpop.f32.mrf.mxu1 }
 0x153   :  { %v377_v30 = vadd.f32 %v2949_v37, %v376_v24  ;;  %v807_v31 = vadd.f32 %v2949_v37, %v806_v25  ;;  %v3352_v37 = vld [vmem:[%s3621_s2] ss:$0 sm:$0xff] }
 0x154   :  { %1998 = vst.msk [vmem:[%s3623_s3 + $0x58] sm:$0xf] %vm1975_vm1, %v1948_v20  ;;  %v1372_v28 = vmax.f32 %v1283_v22, 0.0  ;;  %v1802_v29 = vmax.f32 %v1713_v23, 0.0 }
 0x155   :  { %2165 = vmatmul.msk.bf16.gmra.mxu0 %vm231_vm0, %v2705_v18  ;;  %2335 = vmatmul.msk.bf16.gmra.mxu1 %vm231_vm0, %v2729_v19  ;;  %v464_v35 = vmax.f32 %v377_v30, 0.0  ;;  %v894_v36 = vmax.f32 %v807_v31, 0.0 }
 0x156   :  { %v1851_v33 = vmax.f32 %v1372_v28, %v1802_v29  ;;  %2505 = vmatmul.msk.bf16.gmra.mxu2 %vm231_vm0, %v2753_v26  ;;  %2675 = vmatmul.msk.bf16.gmra.mxu3 %vm231_vm0, %v2777_v27  ;;  %v2707_v27 = vld [vmem:[%s3622_s0 + $0xb0] sm:$0xff] }
 0x157   :  { %v943_v45 = vmax.f32 %v464_v35, %v894_v36  ;;  %v2731_v28 = vld [vmem:[%s3622_s0 + $0x174] sm:$0xff]  ;;  %v2779_v36 = vld [vmem:[%s3622_s0 + $0x2fc] sm:$0xff] }
 0x158   :  { %v1900_v34 = vmax.f32 %v942_v32, %v1851_v33  ;;  %v2755_v35 = vld [vmem:[%s3622_s0 + $0x238] sm:$0xff] }
 0x159   :  { %v1285_v38 = vpop.f32.mrf.mxu2  ;;  %v1715_v39 = vpop.f32.mrf.mxu3 }
 0x15a   :  { %v1949_v40 = vpack.c.bf16 %v1900_v34, %v1900_v34  ;;  %v1286_v41 = vadd.f32 %v3352_v37, %v1285_v38  ;;  %v1716_v42 = vadd.f32 %v3352_v37, %v1715_v39  ;;  %v378_v43 = vpop.f32.mrf.mxu0  ;;  %v808_v44 = vpop.f32.mrf.mxu1 }
 0x15b   :  { %v379_v48 = vadd.f32 %v3352_v37, %v378_v43  ;;  %v809_v50 = vadd.f32 %v3352_v37, %v808_v44 }
 0x15c   :  { %1999 = vst.msk [vmem:[%s3623_s3 + $0x5c] sm:$0xf] %vm1975_vm1, %v1949_v40  ;;  %v1373_v46 = vmax.f32 %v1286_v41, 0.0  ;;  %v1803_v47 = vmax.f32 %v1716_v42, 0.0 }
 0x15d   :  { %v465_v52 = vmax.f32 %v379_v48, 0.0  ;;  %v895_v58 = vmax.f32 %v809_v50, 0.0 }
 0x15e   :  { %v1852_v49 = vmax.f32 %v1373_v46, %v1803_v47 }
 0x15f   :  { %v944_v5 = vmax.f32 %v465_v52, %v895_v58 }
 0x160   :  { %v1901_v51 = vmax.f32 %v943_v45, %v1852_v49 }
 0x161   :  { %v1287_v53 = vpop.f32.mrf.mxu2  ;;  %v1717_v54 = vpop.f32.mrf.mxu3 }
 0x162   :  { %v1950_v57 = vpack.c.bf16 %v1901_v51, %v1901_v51  ;;  %v1288_v59 = vadd.f32 %v3352_v37, %v1287_v53  ;;  %v1718_v60 = vadd.f32 %v3352_v37, %v1717_v54  ;;  %v381_v61 = vpop.f32.mrf.mxu0  ;;  %v811_v62 = vpop.f32.mrf.mxu1 }
 0x163   :  { %v382_v3 = vadd.f32 %v3352_v37, %v381_v61  ;;  %v812_v4 = vadd.f32 %v3352_v37, %v811_v62 }
 0x164   :  { %2000 = vst.msk [vmem:[%s3623_s3 + $0x60] sm:$0xf] %vm1975_vm1, %v1950_v57  ;;  %v1374_v1 = vmax.f32 %v1288_v59, 0.0  ;;  %v1804_v2 = vmax.f32 %v1718_v60, 0.0 }
 0x165   :  { %2166 = vmatmul.msk.bf16.gmra.mxu0 %vm231_vm0, %v2706_v55  ;;  %2336 = vmatmul.msk.bf16.gmra.mxu1 %vm231_vm0, %v2730_v56  ;;  %v466_v8 = vmax.f32 %v382_v3, 0.0  ;;  %v896_v9 = vmax.f32 %v812_v4, 0.0 }
 0x166   :  { %v1853_v6 = vmax.f32 %v1374_v1, %v1804_v2  ;;  %2506 = vmatmul.msk.bf16.gmra.mxu2 %vm231_vm0, %v2754_v63  ;;  %2676 = vmatmul.msk.bf16.gmra.mxu3 %vm231_vm0, %v2778_v0  ;;  %v2708_v0 = vld [vmem:[%s3622_s0 + $0xb8] sm:$0xff] }
 0x167   :  { %v945_v17 = vmax.f32 %v466_v8, %v896_v9  ;;  %v2732_v1 = vld [vmem:[%s3622_s0 + $0x17c] sm:$0xff]  ;;  %v2780_v9 = vld [vmem:[%s3622_s0 + $0x304] sm:$0xff] }
 0x168   :  { %v1902_v7 = vmax.f32 %v944_v5, %v1853_v6  ;;  %v2756_v8 = vld [vmem:[%s3622_s0 + $0x240] sm:$0xff] }
 0x169   :  { %v1290_v10 = vpop.f32.mrf.mxu2  ;;  %v1720_v11 = vpop.f32.mrf.mxu3 }
 0x16a   :  { %v1951_v12 = vpack.c.bf16 %v1902_v7, %v1902_v7  ;;  %v1291_v13 = vadd.f32 %v3352_v37, %v1290_v10  ;;  %v1721_v14 = vadd.f32 %v3352_v37, %v1720_v11  ;;  %v383_v15 = vpop.f32.mrf.mxu0  ;;  %v813_v16 = vpop.f32.mrf.mxu1 }
 0x16b   :  { %v384_v20 = vadd.f32 %v3352_v37, %v383_v15  ;;  %v814_v22 = vadd.f32 %v3352_v37, %v813_v16 }
 0x16c   :  { %2001 = vst.msk [vmem:[%s3623_s3 + $0x64] sm:$0xf] %vm1975_vm1, %v1951_v12  ;;  %v1375_v18 = vmax.f32 %v1291_v13, 0.0  ;;  %v1805_v19 = vmax.f32 %v1721_v14, 0.0 }
 0x16d   :  { %v467_v24 = vmax.f32 %v384_v20, 0.0  ;;  %v897_v30 = vmax.f32 %v814_v22, 0.0 }
 0x16e   :  { %v1854_v21 = vmax.f32 %v1375_v18, %v1805_v19 }
 0x16f   :  { %v946_v42 = vmax.f32 %v467_v24, %v897_v30 }
 0x170   :  { %v1903_v23 = vmax.f32 %v945_v17, %v1854_v21  ;;  %v74_v21 = vld [vmem:[%s3622_s0 + $0xc0] sm:$0xf] }
 0x171   :  { %v1292_v25 = vpop.f32.mrf.mxu2  ;;  %v1722_v26 = vpop.f32.mrf.mxu3 }
 0x172   :  { %v1952_v29 = vpack.c.bf16 %v1903_v23, %v1903_v23  ;;  %v1293_v31 = vadd.f32 %v3352_v37, %v1292_v25  ;;  %v1723_v32 = vadd.f32 %v3352_v37, %v1722_v26  ;;  %v386_v33 = vpop.f32.mrf.mxu0  ;;  %v816_v34 = vpop.f32.mrf.mxu1 }
 0x173   :  { %v387_v40 = vadd.f32 %v3352_v37, %v386_v33  ;;  %v817_v41 = vadd.f32 %v3352_v37, %v816_v34  ;;  %v175_v33 = vunpack.c.l.b16 %v74_v21 }
 0x174   :  { %2002 = vst.msk [vmem:[%s3623_s3 + $0x68] sm:$0xf] %vm1975_vm1, %v1952_v29  ;;  %v1376_v38 = vmax.f32 %v1293_v31, 0.0  ;;  %v1806_v39 = vmax.f32 %v1723_v32, 0.0  ;;  %v2558_v29 = vld [vmem:[%s3622_s0 + $0x30c] sm:$0xf] }
 0x175   :  { %2167 = vmatmul.msk.bf16.gmra.mxu0 %vm231_vm0, %v2707_v27  ;;  %2337 = vmatmul.msk.bf16.gmra.mxu1 %vm231_vm0, %v2731_v28  ;;  %v468_v45 = vmax.f32 %v387_v40, 0.0  ;;  %v898_v46 = vmax.f32 %v817_v41, 0.0  ;;  %v2218_v27 = vld [vmem:[%s3622_s0 + $0x184] sm:$0xf]  ;;  %v2388_v28 = vld [vmem:[%s3622_s0 + $0x248] sm:$0xf] }
 0x176   :  { %v1855_v43 = vmax.f32 %v1376_v38, %v1806_v39  ;;  %2507 = vmatmul.msk.bf16.gmra.mxu2 %vm231_vm0, %v2755_v35  ;;  %2677 = vmatmul.msk.bf16.gmra.mxu3 %vm231_vm0, %v2779_v36  ;;  %v636_v35 = vunpack.c.l.b16 %v2218_v27  ;;  %v1115_v36 = vunpack.c.l.b16 %v2388_v28  ;;  %v1545_v38 = vunpack.c.l.b16 %v2558_v29 }
 0x177   :  { %v947_v54 = vmax.f32 %v468_v45, %v898_v46 }
 0x178   :  { %v1904_v44 = vmax.f32 %v946_v42, %v1855_v43  ;;  %v200_v42 = vpack.c.b16 %v175_v33, %v175_v33  ;;  %v661_v46 = vpack.c.b16 %v636_v35, %v636_v35 }
 0x179   :  { %v1295_v47 = vpop.f32.mrf.mxu2  ;;  %v1725_v48 = vpop.f32.mrf.mxu3 }
 0x17a   :  { %v1953_v49 = vpack.c.bf16 %v1904_v44, %v1904_v44  ;;  %v1296_v50 = vadd.f32 %v3352_v37, %v1295_v47  ;;  %v1726_v51 = vadd.f32 %v3352_v37, %v1725_v48  ;;  %v388_v52 = vpop.f32.mrf.mxu0  ;;  %v818_v53 = vpop.f32.mrf.mxu1  ;;  %v1140_v47 = vpack.c.b16 %v1115_v36, %v1115_v36 }
 0x17b   :  { %v389_v57 = vadd.f32 %v3352_v37, %v388_v52  ;;  %v819_v59 = vadd.f32 %v3352_v37, %v818_v53  ;;  %v1570_v48 = vpack.c.b16 %v1545_v38, %v1545_v38 }
 0x17c   :  { %2003 = vst.msk [vmem:[%s3623_s3 + $0x6c] sm:$0xf] %vm1975_vm1, %v1953_v49  ;;  %v1377_v55 = vmax.f32 %v1296_v50, 0.0  ;;  %v1807_v56 = vmax.f32 %v1726_v51, 0.0 }
 0x17d   :  { %v469_v61 = vmax.f32 %v389_v57, 0.0  ;;  %v899_v3 = vmax.f32 %v819_v59, 0.0 }
 0x17e   :  { %v1856_v58 = vmax.f32 %v1377_v55, %v1807_v56 }
 0x17f   :  { %v948_v14 = vmax.f32 %v469_v61, %v899_v3 }
 0x180   :  { %v1905_v60 = vmax.f32 %v947_v54, %v1856_v58 }
 0x181   :  { %v1297_v62 = vpop.f32.mrf.mxu2  ;;  %v1727_v63 = vpop.f32.mrf.mxu3 }
 0x182   :  { %v1954_v2 = vpack.c.bf16 %v1905_v60, %v1905_v60  ;;  %v1298_v4 = vadd.f32 %v3352_v37, %v1297_v62  ;;  %v1728_v5 = vadd.f32 %v3352_v37, %v1727_v63  ;;  %v391_v6 = vpop.f32.mrf.mxu0  ;;  %v821_v7 = vpop.f32.mrf.mxu1 }
 0x183   :  { %v392_v12 = vadd.f32 %v3352_v37, %v391_v6  ;;  %v822_v13 = vadd.f32 %v3352_v37, %v821_v7 }
 0x184   :  { %2004 = vst.msk [vmem:[%s3623_s3 + $0x70] sm:$0xf] %vm1975_vm1, %v1954_v2  ;;  %v1378_v10 = vmax.f32 %v1298_v4, 0.0  ;;  %v1808_v11 = vmax.f32 %v1728_v5, 0.0 }
 0x185   :  { %2168 = vmatmul.msk.bf16.gmra.mxu0 %vm231_vm0, %v2708_v0  ;;  %2338 = vmatmul.msk.bf16.gmra.mxu1 %vm231_vm0, %v2732_v1  ;;  %v470_v17 = vmax.f32 %v392_v12, 0.0  ;;  %v900_v18 = vmax.f32 %v822_v13, 0.0 }
 0x186   :  { %v1857_v15 = vmax.f32 %v1378_v10, %v1808_v11  ;;  %2508 = vmatmul.msk.bf16.gmra.mxu2 %vm231_vm0, %v2756_v8  ;;  %2678 = vmatmul.msk.bf16.gmra.mxu3 %vm231_vm0, %v2780_v9 }
 0x187   :  { %v949_v30 = vmax.f32 %v470_v17, %v900_v18 }
 0x188   :  { %v1906_v16 = vmax.f32 %v948_v14, %v1857_v15 }
 0x189   :  { %v1300_v19 = vpop.f32.mrf.mxu2  ;;  %v1730_v20 = vpop.f32.mrf.mxu3 }
 0x18a   :  { %v1955_v22 = vpack.c.bf16 %v1906_v16, %v1906_v16  ;;  %v1301_v23 = vadd.f32 %v3352_v37, %v1300_v19  ;;  %v1731_v24 = vadd.f32 %v3352_v37, %v1730_v20  ;;  %v393_v25 = vpop.f32.mrf.mxu0  ;;  %v823_v26 = vpop.f32.mrf.mxu1 }
 0x18b   :  { %v394_v34 = vadd.f32 %v3352_v37, %v393_v25  ;;  %v824_v40 = vadd.f32 %v3352_v37, %v823_v26 }
 0x18c   :  { %2005 = vst.msk [vmem:[%s3623_s3 + $0x74] sm:$0xf] %vm1975_vm1, %v1955_v22  ;;  %v1379_v31 = vmax.f32 %v1301_v23, 0.0  ;;  %v1809_v32 = vmax.f32 %v1731_v24, 0.0 }
 0x18d   :  { %v471_v43 = vmax.f32 %v394_v34, 0.0  ;;  %v901_v50 = vmax.f32 %v824_v40, 0.0 }
 0x18e   :  { %v1858_v39 = vmax.f32 %v1379_v31, %v1809_v32 }
 0x18f   :  { %v950_v59 = vmax.f32 %v471_v43, %v901_v50 }
 0x190   :  { %v1907_v41 = vmax.f32 %v949_v30, %v1858_v39 }
 0x191   :  { %v1302_v44 = vpop.f32.mrf.mxu2  ;;  %v1732_v45 = vpop.f32.mrf.mxu3 }
 0x192   :  { %v1956_v49 = vpack.c.bf16 %v1907_v41, %v1907_v41  ;;  %v1303_v51 = vadd.f32 %v3352_v37, %v1302_v44  ;;  %v1733_v52 = vadd.f32 %v3352_v37, %v1732_v45  ;;  %v396_v53 = vpop.f32.mrf.mxu0  ;;  %v826_v54 = vpop.f32.mrf.mxu1 }
 0x193   :  { %v397_v57 = vadd.f32 %v3352_v37, %v396_v53  ;;  %v827_v58 = vadd.f32 %v3352_v37, %v826_v54 }
 0x194   :  { %2006 = vst.msk [vmem:[%s3623_s3 + $0x78] sm:$0xf] %vm1975_vm1, %v1956_v49  ;;  %v1380_v55 = vmax.f32 %v1303_v51, 0.0  ;;  %v1810_v56 = vmax.f32 %v1733_v52, 0.0 }
 0x195   :  { %2169 = vmatmul.msk.bf16.gmra.mxu0 %vm231_vm0, %v200_v42  ;;  %2339 = vmatmul.msk.bf16.gmra.mxu1 %vm231_vm0, %v661_v46  ;;  %v472_v62 = vmax.f32 %v397_v57, 0.0  ;;  %v902_v63 = vmax.f32 %v827_v58, 0.0 }
 0x196   :  { %v1859_v60 = vmax.f32 %v1380_v55, %v1810_v56  ;;  %2509 = vmatmul.msk.bf16.gmra.mxu2 %vm231_vm0, %v1140_v47  ;;  %2679 = vmatmul.msk.bf16.gmra.mxu3 %vm231_vm0, %v1570_v48 }
 0x197   :  { %v951_v7 = vmax.f32 %v472_v62, %v902_v63 }
 0x198   :  { %v1908_v61 = vmax.f32 %v950_v59, %v1859_v60 }
 0x199   :  { %v1305_v0 = vpop.f32.mrf.mxu2  ;;  %v1735_v1 = vpop.f32.mrf.mxu3 }
 0x19a   :  { %v1957_v2 = vpack.c.bf16 %v1908_v61, %v1908_v61  ;;  %v1306_v3 = vadd.f32 %v3352_v37, %v1305_v0  ;;  %v1736_v4 = vadd.f32 %v3352_v37, %v1735_v1  ;;  %v398_v5 = vpop.f32.mrf.mxu0  ;;  %v828_v6 = vpop.f32.mrf.mxu1 }
 0x19b   :  { %v399_v10 = vadd.f32 %v3352_v37, %v398_v5  ;;  %v829_v12 = vadd.f32 %v3352_v37, %v828_v6 }
 0x19c   :  { %2007 = vst.msk [vmem:[%s3623_s3 + $0x7c] sm:$0xf] %vm1975_vm1, %v1957_v2  ;;  %v1381_v8 = vmax.f32 %v1306_v3, 0.0  ;;  %v1811_v9 = vmax.f32 %v1736_v4, 0.0 }
 0x19d   :  { %v473_v14 = vmax.f32 %v399_v10, 0.0  ;;  %v903_v18 = vmax.f32 %v829_v12, 0.0 }
 0x19e   :  { %v1860_v11 = vmax.f32 %v1381_v8, %v1811_v9 }
 0x19f   :  { %v952_v27 = vmax.f32 %v473_v14, %v903_v18 }
 0x1a0   :  { %v1909_v13 = vmax.f32 %v951_v7, %v1860_v11 }
 0x1a1   :  { %v1307_v15 = vpop.f32.mrf.mxu2  ;;  %v1737_v16 = vpop.f32.mrf.mxu3 }
 0x1a2   :  { %v1958_v17 = vpack.c.bf16 %v1909_v13, %v1909_v13  ;;  %v1308_v19 = vadd.f32 %v3352_v37, %v1307_v15  ;;  %v1738_v20 = vadd.f32 %v3352_v37, %v1737_v16  ;;  %v401_v21 = vpop.f32.mrf.mxu0  ;;  %v831_v22 = vpop.f32.mrf.mxu1 }
 0x1a3   :  { %v402_v25 = vadd.f32 %v3352_v37, %v401_v21  ;;  %v832_v26 = vadd.f32 %v3352_v37, %v831_v22 }
 0x1a4   :  { %2008 = vst.msk [vmem:[%s3623_s3 + $0x80] sm:$0xf] %vm1975_vm1, %v1958_v17  ;;  %v1382_v23 = vmax.f32 %v1308_v19, 0.0  ;;  %v1812_v24 = vmax.f32 %v1738_v20, 0.0 }
 0x1a5   :  { %v474_v30 = vmax.f32 %v402_v25, 0.0  ;;  %v904_v31 = vmax.f32 %v832_v26, 0.0 }
 0x1a6   :  { %v1861_v28 = vmax.f32 %v1382_v23, %v1812_v24 }
 0x1a7   :  { %v953_v40 = vmax.f32 %v474_v30, %v904_v31 }
 0x1a8   :  { %v1910_v29 = vmax.f32 %v952_v27, %v1861_v28 }
 0x1a9   :  { %v1310_v32 = vpop.f32.mrf.mxu2  ;;  %v1740_v33 = vpop.f32.mrf.mxu3 }
 0x1aa   :  { %v1959_v34 = vpack.c.bf16 %v1910_v29, %v1910_v29  ;;  %v1311_v35 = vadd.f32 %v3352_v37, %v1310_v32  ;;  %v1741_v36 = vadd.f32 %v3352_v37, %v1740_v33  ;;  %v403_v38 = vpop.f32.mrf.mxu0  ;;  %v833_v39 = vpop.f32.mrf.mxu1 }
 0x1ab   :  { %v404_v43 = vadd.f32 %v3352_v37, %v403_v38  ;;  %v834_v45 = vadd.f32 %v3352_v37, %v833_v39 }
 0x1ac   :  { %2009 = vst.msk [vmem:[%s3623_s3 + $0x84] sm:$0xf] %vm1975_vm1, %v1959_v34  ;;  %v1383_v41 = vmax.f32 %v1311_v35, 0.0  ;;  %v1813_v42 = vmax.f32 %v1741_v36, 0.0 }
 0x1ad   :  { %v475_v47 = vmax.f32 %v404_v43, 0.0  ;;  %v905_v51 = vmax.f32 %v834_v45, 0.0 }
 0x1ae   :  { %v1862_v44 = vmax.f32 %v1383_v41, %v1813_v42 }
 0x1af   :  { %v954_v60 = vmax.f32 %v475_v47, %v905_v51 }
 0x1b0   :  { %v1911_v46 = vmax.f32 %v953_v40, %v1862_v44 }
 0x1b1   :  { %v1312_v48 = vpop.f32.mrf.mxu2  ;;  %v1742_v49 = vpop.f32.mrf.mxu3 }
 0x1b2   :  { %v1960_v50 = vpack.c.bf16 %v1911_v46, %v1911_v46  ;;  %v1313_v52 = vadd.f32 %v3352_v37, %v1312_v48  ;;  %v1743_v53 = vadd.f32 %v3352_v37, %v1742_v49  ;;  %v406_v54 = vpop.f32.mrf.mxu0  ;;  %v836_v55 = vpop.f32.mrf.mxu1 }
 0x1b3   :  { %v407_v58 = vadd.f32 %v3352_v37, %v406_v54  ;;  %v837_v59 = vadd.f32 %v3352_v37, %v836_v55 }
 0x1b4   :  { %2010 = vst.msk [vmem:[%s3623_s3 + $0x88] sm:$0xf] %vm1975_vm1, %v1960_v50  ;;  %v1384_v56 = vmax.f32 %v1313_v52, 0.0  ;;  %v1814_v57 = vmax.f32 %v1743_v53, 0.0 }
 0x1b5   :  { %v476_v63 = vmax.f32 %v407_v58, 0.0  ;;  %v906_v0 = vmax.f32 %v837_v59, 0.0 }
 0x1b6   :  { %v1863_v61 = vmax.f32 %v1384_v56, %v1814_v57 }
 0x1b7   :  { %v955_v8 = vmax.f32 %v476_v63, %v906_v0 }
 0x1b8   :  { %v1912_v62 = vmax.f32 %v954_v60, %v1863_v61 }
 0x1b9   :  { %v1315_v1 = vpop.f32.mrf.mxu2  ;;  %v1745_v2 = vpop.f32.mrf.mxu3 }
 0x1ba   :  { %v1961_v3 = vpack.c.bf16 %v1912_v62, %v1912_v62  ;;  %v1316_v4 = vadd.f32 %v3352_v37, %v1315_v1  ;;  %v1746_v5 = vadd.f32 %v3352_v37, %v1745_v2  ;;  %v408_v6 = vpop.f32.mrf.mxu0  ;;  %v838_v7 = vpop.f32.mrf.mxu1 }
 0x1bb   :  { %v409_v11 = vadd.f32 %v3352_v37, %v408_v6  ;;  %v839_v13 = vadd.f32 %v3352_v37, %v838_v7 }
 0x1bc   :  { %2011 = vst.msk [vmem:[%s3623_s3 + $0x8c] sm:$0xf] %vm1975_vm1, %v1961_v3  ;;  %v1385_v9 = vmax.f32 %v1316_v4, 0.0  ;;  %v1815_v10 = vmax.f32 %v1746_v5, 0.0 }
 0x1bd   :  { %v477_v15 = vmax.f32 %v409_v11, 0.0  ;;  %v907_v19 = vmax.f32 %v839_v13, 0.0 }
 0x1be   :  { %v1864_v12 = vmax.f32 %v1385_v9, %v1815_v10 }
 0x1bf   :  { %v956_v28 = vmax.f32 %v477_v15, %v907_v19 }
 0x1c0   :  { %v1913_v14 = vmax.f32 %v955_v8, %v1864_v12 }
 0x1c1   :  { %v1317_v16 = vpop.f32.mrf.mxu2  ;;  %v1747_v17 = vpop.f32.mrf.mxu3 }
 0x1c2   :  { %v1962_v18 = vpack.c.bf16 %v1913_v14, %v1913_v14  ;;  %v1318_v20 = vadd.f32 %v3352_v37, %v1317_v16  ;;  %v1748_v21 = vadd.f32 %v3352_v37, %v1747_v17  ;;  %v411_v22 = vpop.f32.mrf.mxu0  ;;  %v841_v23 = vpop.f32.mrf.mxu1 }
 0x1c3   :  { %v412_v26 = vadd.f32 %v3352_v37, %v411_v22  ;;  %v842_v27 = vadd.f32 %v3352_v37, %v841_v23 }
 0x1c4   :  { %2012 = vst.msk [vmem:[%s3623_s3 + $0x90] sm:$0xf] %vm1975_vm1, %v1962_v18  ;;  %v1386_v24 = vmax.f32 %v1318_v20, 0.0  ;;  %v1816_v25 = vmax.f32 %v1748_v21, 0.0 }
 0x1c5   :  { %v478_v31 = vmax.f32 %v412_v26, 0.0  ;;  %v908_v32 = vmax.f32 %v842_v27, 0.0 }
 0x1c6   :  { %v1865_v29 = vmax.f32 %v1386_v24, %v1816_v25 }
 0x1c7   :  { %v957_v41 = vmax.f32 %v478_v31, %v908_v32 }
 0x1c8   :  { %v1914_v30 = vmax.f32 %v956_v28, %v1865_v29 }
 0x1c9   :  { %v1320_v33 = vpop.f32.mrf.mxu2  ;;  %v1750_v34 = vpop.f32.mrf.mxu3 }
 0x1ca   :  { %v1963_v35 = vpack.c.bf16 %v1914_v30, %v1914_v30  ;;  %v1321_v36 = vadd.f32 %v3352_v37, %v1320_v33  ;;  %v1751_v38 = vadd.f32 %v3352_v37, %v1750_v34  ;;  %v413_v39 = vpop.f32.mrf.mxu0  ;;  %v843_v40 = vpop.f32.mrf.mxu1 }
 0x1cb   :  { %v414_v44 = vadd.f32 %v3352_v37, %v413_v39  ;;  %v844_v46 = vadd.f32 %v3352_v37, %v843_v40 }
 0x1cc   :  { %2013 = vst.msk [vmem:[%s3623_s3 + $0x94] sm:$0xf] %vm1975_vm1, %v1963_v35  ;;  %v1387_v42 = vmax.f32 %v1321_v36, 0.0  ;;  %v1817_v43 = vmax.f32 %v1751_v38, 0.0 }
 0x1cd   :  { %v479_v48 = vmax.f32 %v414_v44, 0.0  ;;  %v909_v52 = vmax.f32 %v844_v46, 0.0 }
 0x1ce   :  { %v1866_v45 = vmax.f32 %v1387_v42, %v1817_v43 }
 0x1cf   :  { %v958_v61 = vmax.f32 %v479_v48, %v909_v52 }
 0x1d0   :  { %v1915_v47 = vmax.f32 %v957_v41, %v1866_v45 }
 0x1d1   :  { %v1322_v49 = vpop.f32.mrf.mxu2  ;;  %v1752_v50 = vpop.f32.mrf.mxu3 }
 0x1d2   :  { %v1964_v51 = vpack.c.bf16 %v1915_v47, %v1915_v47  ;;  %v1323_v53 = vadd.f32 %v3352_v37, %v1322_v49  ;;  %v1753_v54 = vadd.f32 %v3352_v37, %v1752_v50  ;;  %v416_v55 = vpop.f32.mrf.mxu0  ;;  %v846_v56 = vpop.f32.mrf.mxu1 }
 0x1d3   :  { %v417_v59 = vadd.f32 %v3352_v37, %v416_v55  ;;  %v847_v60 = vadd.f32 %v3352_v37, %v846_v56 }
 0x1d4   :  { %2014 = vst.msk [vmem:[%s3623_s3 + $0x98] sm:$0xf] %vm1975_vm1, %v1964_v51  ;;  %v1388_v57 = vmax.f32 %v1323_v53, 0.0  ;;  %v1818_v58 = vmax.f32 %v1753_v54, 0.0 }
 0x1d5   :  { %v480_v0 = vmax.f32 %v417_v59, 0.0  ;;  %v910_v1 = vmax.f32 %v847_v60, 0.0 }
 0x1d6   :  { %v1867_v62 = vmax.f32 %v1388_v57, %v1818_v58 }
 0x1d7   :  { %v959_v9 = vmax.f32 %v480_v0, %v910_v1 }
 0x1d8   :  { %v1916_v63 = vmax.f32 %v958_v61, %v1867_v62 }
 0x1d9   :  { %v1325_v2 = vpop.f32.mrf.mxu2  ;;  %v1755_v3 = vpop.f32.mrf.mxu3 }
 0x1da   :  { %v1965_v4 = vpack.c.bf16 %v1916_v63, %v1916_v63  ;;  %v1326_v5 = vadd.f32 %v3352_v37, %v1325_v2  ;;  %v1756_v6 = vadd.f32 %v3352_v37, %v1755_v3  ;;  %v418_v7 = vpop.f32.mrf.mxu0  ;;  %v848_v8 = vpop.f32.mrf.mxu1 }
 0x1db   :  { %v419_v12 = vadd.f32 %v3352_v37, %v418_v7  ;;  %v849_v14 = vadd.f32 %v3352_v37, %v848_v8 }
 0x1dc   :  { %2015 = vst.msk [vmem:[%s3623_s3 + $0x9c] sm:$0xf] %vm1975_vm1, %v1965_v4  ;;  %v1389_v10 = vmax.f32 %v1326_v5, 0.0  ;;  %v1819_v11 = vmax.f32 %v1756_v6, 0.0 }
 0x1dd   :  { %v481_v16 = vmax.f32 %v419_v12, 0.0  ;;  %v911_v20 = vmax.f32 %v849_v14, 0.0 }
 0x1de   :  { %v1868_v13 = vmax.f32 %v1389_v10, %v1819_v11 }
 0x1df   :  { %v960_v29 = vmax.f32 %v481_v16, %v911_v20 }
 0x1e0   :  { %v1917_v15 = vmax.f32 %v959_v9, %v1868_v13 }
 0x1e1   :  { %v1327_v17 = vpop.f32.mrf.mxu2  ;;  %v1757_v18 = vpop.f32.mrf.mxu3 }
 0x1e2   :  { %v1966_v19 = vpack.c.bf16 %v1917_v15, %v1917_v15  ;;  %v1328_v21 = vadd.f32 %v3352_v37, %v1327_v17  ;;  %v1758_v22 = vadd.f32 %v3352_v37, %v1757_v18  ;;  %v421_v23 = vpop.f32.mrf.mxu0  ;;  %v851_v24 = vpop.f32.mrf.mxu1 }
 0x1e3   :  { %v422_v27 = vadd.f32 %v3352_v37, %v421_v23  ;;  %v852_v28 = vadd.f32 %v3352_v37, %v851_v24 }
 0x1e4   :  { %2016 = vst.msk [vmem:[%s3623_s3 + $0xa0] sm:$0xf] %vm1975_vm1, %v1966_v19  ;;  %v1390_v25 = vmax.f32 %v1328_v21, 0.0  ;;  %v1820_v26 = vmax.f32 %v1758_v22, 0.0 }
 0x1e5   :  { %v482_v32 = vmax.f32 %v422_v27, 0.0  ;;  %v912_v33 = vmax.f32 %v852_v28, 0.0 }
 0x1e6   :  { %v1869_v30 = vmax.f32 %v1390_v25, %v1820_v26 }
 0x1e7   :  { %v961_v42 = vmax.f32 %v482_v32, %v912_v33 }
 0x1e8   :  { %v1918_v31 = vmax.f32 %v960_v29, %v1869_v30 }
 0x1e9   :  { %v1330_v34 = vpop.f32.mrf.mxu2  ;;  %v1760_v35 = vpop.f32.mrf.mxu3 }
 0x1ea   :  { %v1967_v36 = vpack.c.bf16 %v1918_v31, %v1918_v31  ;;  %v1331_v38 = vadd.f32 %v3352_v37, %v1330_v34  ;;  %v1761_v39 = vadd.f32 %v3352_v37, %v1760_v35  ;;  %v423_v40 = vpop.f32.mrf.mxu0  ;;  %v853_v41 = vpop.f32.mrf.mxu1 }
 0x1eb   :  { %v424_v45 = vadd.f32 %v3352_v37, %v423_v40  ;;  %v854_v47 = vadd.f32 %v3352_v37, %v853_v41 }
 0x1ec   :  { %2017 = vst.msk [vmem:[%s3623_s3 + $0xa4] sm:$0xf] %vm1975_vm1, %v1967_v36  ;;  %v1391_v43 = vmax.f32 %v1331_v38, 0.0  ;;  %v1821_v44 = vmax.f32 %v1761_v39, 0.0 }
 0x1ed   :  { %v483_v49 = vmax.f32 %v424_v45, 0.0  ;;  %v913_v53 = vmax.f32 %v854_v47, 0.0 }
 0x1ee   :  { %v1870_v46 = vmax.f32 %v1391_v43, %v1821_v44 }
 0x1ef   :  { %v962_v62 = vmax.f32 %v483_v49, %v913_v53 }
 0x1f0   :  { %v1919_v48 = vmax.f32 %v961_v42, %v1870_v46 }
 0x1f1   :  { %v1332_v50 = vpop.f32.mrf.mxu2  ;;  %v1762_v51 = vpop.f32.mrf.mxu3 }
 0x1f2   :  { %v1968_v52 = vpack.c.bf16 %v1919_v48, %v1919_v48  ;;  %v1333_v54 = vadd.f32 %v3352_v37, %v1332_v50  ;;  %v1763_v55 = vadd.f32 %v3352_v37, %v1762_v51  ;;  %v426_v56 = vpop.f32.mrf.mxu0  ;;  %v856_v57 = vpop.f32.mrf.mxu1 }
 0x1f3   :  { %v427_v60 = vadd.f32 %v3352_v37, %v426_v56  ;;  %v857_v61 = vadd.f32 %v3352_v37, %v856_v57 }
 0x1f4   :  { %2018 = vst.msk [vmem:[%s3623_s3 + $0xa8] sm:$0xf] %vm1975_vm1, %v1968_v52  ;;  %v1392_v58 = vmax.f32 %v1333_v54, 0.0  ;;  %v1822_v59 = vmax.f32 %v1763_v55, 0.0 }
 0x1f5   :  { %v484_v1 = vmax.f32 %v427_v60, 0.0  ;;  %v914_v2 = vmax.f32 %v857_v61, 0.0 }
 0x1f6   :  { %v1871_v63 = vmax.f32 %v1392_v58, %v1822_v59 }
 0x1f7   :  { %v963_v10 = vmax.f32 %v484_v1, %v914_v2 }
 0x1f8   :  { %v1920_v0 = vmax.f32 %v962_v62, %v1871_v63 }
 0x1f9   :  { %v1335_v3 = vpop.f32.mrf.mxu2  ;;  %v1765_v4 = vpop.f32.mrf.mxu3 }
 0x1fa   :  { %v1969_v5 = vpack.c.bf16 %v1920_v0, %v1920_v0  ;;  %v1336_v6 = vadd.f32 %v3352_v37, %v1335_v3  ;;  %v1766_v7 = vadd.f32 %v3352_v37, %v1765_v4  ;;  %v428_v8 = vpop.f32.mrf.mxu0  ;;  %v858_v9 = vpop.f32.mrf.mxu1 }
 0x1fb   :  { %v429_v13 = vadd.f32 %v3352_v37, %v428_v8  ;;  %v859_v15 = vadd.f32 %v3352_v37, %v858_v9 }
 0x1fc   :  { %2019 = vst.msk [vmem:[%s3623_s3 + $0xac] sm:$0xf] %vm1975_vm1, %v1969_v5  ;;  %v1393_v11 = vmax.f32 %v1336_v6, 0.0  ;;  %v1823_v12 = vmax.f32 %v1766_v7, 0.0 }
 0x1fd   :  { %v485_v17 = vmax.f32 %v429_v13, 0.0  ;;  %v915_v21 = vmax.f32 %v859_v15, 0.0 }
 0x1fe   :  { %v1872_v14 = vmax.f32 %v1393_v11, %v1823_v12 }
 0x1ff   :  { %v964_v30 = vmax.f32 %v485_v17, %v915_v21 }
 0x200   :  { %v1921_v16 = vmax.f32 %v963_v10, %v1872_v14 }
 0x201   :  { %v1337_v18 = vpop.f32.mrf.mxu2  ;;  %v1767_v19 = vpop.f32.mrf.mxu3 }
 0x202   :  { %v1970_v20 = vpack.c.bf16 %v1921_v16, %v1921_v16  ;;  %v1338_v22 = vadd.f32 %v3352_v37, %v1337_v18  ;;  %v1768_v23 = vadd.f32 %v3352_v37, %v1767_v19  ;;  %v431_v24 = vpop.f32.mrf.mxu0  ;;  %v861_v25 = vpop.f32.mrf.mxu1 }
 0x203   :  { %v432_v28 = vadd.f32 %v3352_v37, %v431_v24  ;;  %v862_v29 = vadd.f32 %v3352_v37, %v861_v25 }
 0x204   :  { %2020 = vst.msk [vmem:[%s3623_s3 + $0xb0] sm:$0xf] %vm1975_vm1, %v1970_v20  ;;  %v1394_v26 = vmax.f32 %v1338_v22, 0.0  ;;  %v1824_v27 = vmax.f32 %v1768_v23, 0.0 }
 0x205   :  { %v486_v33 = vmax.f32 %v432_v28, 0.0  ;;  %v916_v34 = vmax.f32 %v862_v29, 0.0 }
 0x206   :  { %v1873_v31 = vmax.f32 %v1394_v26, %v1824_v27 }
 0x207   :  { %v965_v43 = vmax.f32 %v486_v33, %v916_v34 }
 0x208   :  { %v1922_v32 = vmax.f32 %v964_v30, %v1873_v31 }
 0x209   :  { %v1340_v35 = vpop.f32.mrf.mxu2  ;;  %v1770_v36 = vpop.f32.mrf.mxu3 }
 0x20a   :  { %v1971_v38 = vpack.c.bf16 %v1922_v32, %v1922_v32  ;;  %v1341_v39 = vadd.f32 %v3352_v37, %v1340_v35  ;;  %v1771_v40 = vadd.f32 %v3352_v37, %v1770_v36  ;;  %v433_v41 = vpop.f32.mrf.mxu0  ;;  %v863_v42 = vpop.f32.mrf.mxu1 }
 0x20b   :  { %v434_v46 = vadd.f32 %v3352_v37, %v433_v41  ;;  %v864_v48 = vadd.f32 %v3352_v37, %v863_v42 }
 0x20c   :  { %2021 = vst.msk [vmem:[%s3623_s3 + $0xb4] sm:$0xf] %vm1975_vm1, %v1971_v38  ;;  %v1395_v44 = vmax.f32 %v1341_v39, 0.0  ;;  %v1825_v45 = vmax.f32 %v1771_v40, 0.0 }
 0x20d   :  { %v487_v50 = vmax.f32 %v434_v46, 0.0  ;;  %v917_v54 = vmax.f32 %v864_v48, 0.0 }
 0x20e   :  { %v1874_v47 = vmax.f32 %v1395_v44, %v1825_v45 }
 0x20f   :  { %v966_v63 = vmax.f32 %v487_v50, %v917_v54 }
 0x210   :  { %v1923_v49 = vmax.f32 %v965_v43, %v1874_v47 }
 0x211   :  { %v1342_v51 = vpop.f32.mrf.mxu2  ;;  %v1772_v52 = vpop.f32.mrf.mxu3 }
 0x212   :  { %v1972_v53 = vpack.c.bf16 %v1923_v49, %v1923_v49  ;;  %v1343_v55 = vadd.f32 %v3352_v37, %v1342_v51  ;;  %v1773_v56 = vadd.f32 %v3352_v37, %v1772_v52  ;;  %v436_v57 = vpop.f32.mrf.mxu0  ;;  %v866_v58 = vpop.f32.mrf.mxu1 }
 0x213   :  { %v437_v61 = vadd.f32 %v3352_v37, %v436_v57  ;;  %v867_v62 = vadd.f32 %v3352_v37, %v866_v58 }
 0x214   :  { %2022 = vst.msk [vmem:[%s3623_s3 + $0xb8] sm:$0xf] %vm1975_vm1, %v1972_v53  ;;  %v1396_v59 = vmax.f32 %v1343_v55, 0.0  ;;  %v1826_v60 = vmax.f32 %v1773_v56, 0.0 }
 0x215   :  { %v488_v2 = vmax.f32 %v437_v61, 0.0  ;;  %v918_v3 = vmax.f32 %v867_v62, 0.0 }
 0x216   :  { %v1875_v0 = vmax.f32 %v1396_v59, %v1826_v60 }
 0x217   :  { %v967_v11 = vmax.f32 %v488_v2, %v918_v3 }
 0x218   :  { %v1924_v1 = vmax.f32 %v966_v63, %v1875_v0 }
 0x219   :  { %v1345_v4 = vpop.f32.mrf.mxu2  ;;  %v1775_v5 = vpop.f32.mrf.mxu3 }
 0x21a   :  { %v1973_v6 = vpack.c.bf16 %v1924_v1, %v1924_v1  ;;  %v1346_v7 = vadd.f32 %v3352_v37, %v1345_v4  ;;  %v1776_v8 = vadd.f32 %v3352_v37, %v1775_v5  ;;  %v438_v9 = vpop.f32.mrf.mxu0  ;;  %v868_v10 = vpop.f32.mrf.mxu1 }
 0x21c   :  { %2023 = vst.msk [vmem:[%s3623_s3 + $0xbc] sm:$0xf] %vm1975_vm1, %v1973_v6  ;;  %v1397_v12 = vmax.f32 %v1346_v7, 0.0  ;;  %v1827_v13 = vmax.f32 %v1776_v8, 0.0 }
 0x21e   :  { %v1876_v14 = vmax.f32 %v1397_v12, %v1827_v13 }
 0x220   :  { %v1925_v15 = vmax.f32 %v967_v11, %v1876_v14 }
 0x221   :  { %v1347_v16 = vpop.f32.mrf.mxu2  ;;  %v1777_v17 = vpop.f32.mrf.mxu3 }
 0x222   :  { %v1974_v18 = vpack.c.bf16 %v1925_v15, %v1925_v15 }
 0x224   :  { %2024 = vst.msk [vmem:[%s3623_s3 + $0xc0] sm:$0xf] %vm1975_vm1, %v1974_v18 }

// kernel: forward.3
= control target key start
LH: loop header
LB: loop body
LE: loop exit
PB: predicated region body
PF: predicated region fallthrough
CT: control target
= control target key end

     0   :  { %14 = vsyncpa [#allocation3], 0  ;;  %s975_s11 = smov 0   ;;  %s1085_s0 = inlined_call_operand.vmem [shape: bf16[4,25,2,160], index: 0, kind: input, shape index: {}]   ;;  %s1086_s1 = inlined_call_operand.vmem [shape: bf16[160,128], index: 1, kind: input, shape index: {}]   ;;  %s1087_s2 = inlined_call_operand.vmem [shape: f32[1,128], index: 2, kind: input, shape index: {}]   ;;  %s1088_s3 = inlined_call_operand.vmem [shape: bf16[25,128,128], index: 3, kind: input, shape index: {}]   ;;  %s1089_s4 = inlined_call_operand.vmem [shape: f32[1,128], index: 4, kind: input, shape index: {}]   ;;  %s1090_s5 = inlined_call_operand.vmem [shape: bf16[128,128], index: 5, kind: input, shape index: {}]   ;;  %s1091_s6 = inlined_call_operand.vmem [shape: f32[1,128], index: 6, kind: input, shape index: {}]   ;;  %s1092_s7 = inlined_call_operand.vmem [shape: bf16[128,128], index: 7, kind: input, shape index: {}]   ;;  %s1093_s8 = inlined_call_operand.vmem [shape: f32[1,128], index: 8, kind: input, shape index: {}]   ;;  %s1094_s9 = inlined_call_operand.hbm [shape: f32[2,128], index: 9, kind: output, shape index: {}]  }
   0x1   :  { %v868_v0 = vld [vmem:[%s1086_s1] sm:$0xf]  ;;  %v873_v1 = vld [vmem:[%s1086_s1] sm:$0xf0]  ;;  %v878_v2 = vld [vmem:[%s1086_s1 + $0x8] sm:$0xf] }
   0x2   :  { %v883_v3 = vld [vmem:[%s1086_s1 + $0x8] sm:$0xf0]  ;;  %v888_v4 = vld [vmem:[%s1086_s1 + $0x10] sm:$0xf]  ;;  %v893_v5 = vld [vmem:[%s1086_s1 + $0x10] sm:$0xf0] }
   0x3   :  { %v898_v6 = vld [vmem:[%s1086_s1 + $0x18] sm:$0xf]  ;;  %v903_v7 = vld [vmem:[%s1086_s1 + $0x18] sm:$0xf0]  ;;  %v908_v8 = vld [vmem:[%s1086_s1 + $0x20] sm:$0xf] }
   0x4   :  { %v913_v9 = vld [vmem:[%s1086_s1 + $0x20] sm:$0xf0]  ;;  %v918_v10 = vld [vmem:[%s1086_s1 + $0x28] sm:$0xf]  ;;  %v923_v11 = vld [vmem:[%s1086_s1 + $0x28] sm:$0xf0] }
   0x5   :  { %v928_v12 = vld [vmem:[%s1086_s1 + $0x30] sm:$0xf]  ;;  %v933_v13 = vld [vmem:[%s1086_s1 + $0x30] sm:$0xf0]  ;;  %v938_v14 = vld [vmem:[%s1086_s1 + $0x38] sm:$0xf] }
   0x6   :  { %v943_v15 = vld [vmem:[%s1086_s1 + $0x38] sm:$0xf0]  ;;  %v948_v16 = vld [vmem:[%s1086_s1 + $0x40] sm:$0xf]  ;;  %v953_v17 = vld [vmem:[%s1086_s1 + $0x40] sm:$0xf0] }
   0x7   :  { %v958_v18 = vld [vmem:[%s1086_s1 + $0x48] sm:$0xf]  ;;  %v963_v19 = vld [vmem:[%s1086_s1 + $0x48] sm:$0xf0]  ;;  %v968_v20 = vld [vmem:[%s1087_s2] sm:$0x1] }
   0x8   :  { %v769_v21 = vld [vmem:[%s1089_s4] ss:$0 sm:$0xff]  }
   0x9 LB: > { %v600_v22 = vor.u32 %v943_v15, %v938_v14  ;;  %v608_v23 = vor.u32 %v963_v19, %v958_v18  ;;  %v596_v24 = vor.u32 %v933_v13, %v928_v12  ;;  %v604_v25 = vor.u32 %v953_v17, %v948_v16  ;;  %s568_s1 = sshll.u32 %s812_s11, 1  ;;  %s727_s13 = sshll.u32 %s812_s11, 6  ;;  %s812_s11 = sphi %s975_s11, %s65_s11   ;;  %v808_v21 = vphi %v769_v21, %v1095_v21  }
   0xa   : > { %s995_s12 = scalar_lea.vmem %s1085_s0, %s568_s1  ;;  %v592_v27 = vor.u32 %v923_v11, %v918_v10  ;;  %v588_v28 = vor.u32 %v913_v9, %v908_v8  ;;  %vm138_vm0 = vcmask 261120   ;;  %v584_v32 = vor.u32 %v903_v7, %v898_v6  ;;  %s285_s16 = scalar_lea.vmem %s1088_s3, %s727_s13 }
   0xb   : > { %178 = vmatpush.bf16.msra.mxu2 %v600_v22  ;;  %160 = vmatpush.bf16.msra.mxu1 %v608_v23  ;;  %v69_v26 = vld [vmem:[%s995_s12] sm:$0x3]  ;;  %v611_v29 = vld [vmem:[%s995_s12 + $0x32] sm:$0x3]  ;;  %v580_v33 = vor.u32 %v893_v5, %v888_v4  ;;  %v614_v34 = vld [vmem:[%s995_s12 + $0x64] sm:$0x3]  ;;  %v576_v37 = vor.u32 %v883_v3, %v878_v2  ;;  %v572_v38 = vor.u32 %v873_v1, %v868_v0 }
   0xc   : > { %141 = vmatpush.bf16.msra.mxu0 %v600_v22  ;;  %197 = vmatpush.bf16.msra.mxu3 %v608_v23  ;;  %74 = vst [vmem:[#allocation1] ss:$9 sm:$0xff] %v69_v26  ;;  %v617_v39 = vld [vmem:[%s995_s12 + $0x96] sm:$0x3]  ;;  %v735_v44 = vld [vmem:[%s285_s16 + $0x38] sm:$0xff]  ;;  %v733_v47 = vld [vmem:[%s285_s16 + $0x28] sm:$0xff] }
   0xd   : > { %v734_v45 = vld [vmem:[%s285_s16 + $0x30] sm:$0xff]  ;;  %v732_v48 = vld [vmem:[%s285_s16 + $0x20] sm:$0xff]  ;;  %v731_v50 = vld [vmem:[%s285_s16 + $0x18] sm:$0xff]  ;;  %v71_v63 = vperm.slane %v968_v20, 0  ;;  %s65_s11 = sadd.s32 1, %s812_s11  }
   0xe   : > { %v730_v52 = vld [vmem:[%s285_s16 + $0x10] sm:$0xff]  ;;  %v729_v53 = vld [vmem:[%s285_s16 + $0x8] sm:$0xff]  ;;  %v728_v56 = vld [vmem:[%s285_s16] sm:$0xff]  ;;  %p62_p0 = scmp.ge.s32.totalorder %s65_s11, 25  }
   0xf   : > { %179 = vmatpush.bf16.msra.mxu2 %v596_v24  ;;  %161 = vmatpush.bf16.msra.mxu1 %v604_v25  ;;  %v741_v0 = vld [vmem:[%s1090_s5 + $0x28] sm:$0xff] (%p62_p0)  ;;  %v740_v2 = vld [vmem:[%s1090_s5 + $0x20] sm:$0xff] (%p62_p0)  ;;  %v739_v4 = vld [vmem:[%s1090_s5 + $0x18] sm:$0xff] (%p62_p0)  ;;  %s814_s0 = smov (%p62_p0), [#allocation2]  }
  0x10   : > { %142 = vmatpush.bf16.msra.mxu0 %v596_v24  ;;  %198 = vmatpush.bf16.msra.mxu3 %v604_v25  ;;  %v749_v1 = vld [vmem:[%s1092_s7 + $0x28] sm:$0xff] (%p62_p0)  ;;  %v748_v3 = vld [vmem:[%s1092_s7 + $0x20] sm:$0xff] (%p62_p0)  ;;  %v747_v5 = vld [vmem:[%s1092_s7 + $0x18] sm:$0xff] (%p62_p0)  ;;  %s536_s3 = sshll.u32 (%p62_p0), %s814_s0, 4  ;;  %s537_s3 = int_to_ptr.vmem [resolvable:$true] %s536_s3 }
  0x11   :  { %v738_v6 = vld [vmem:[%s1090_s5 + $0x10] sm:$0xff] (%p62_p0)  ;;  %v737_v8 = vld [vmem:[%s1090_s5 + $0x8] sm:$0xff] (%p62_p0)  ;;  %v736_v10 = vld [vmem:[%s1090_s5] sm:$0xff] (%p62_p0) }
  0x12   :  { %v746_v7 = vld [vmem:[%s1092_s7 + $0x10] sm:$0xff] (%p62_p0)  ;;  %v745_v12 = vld [vmem:[%s1092_s7 + $0x8] sm:$0xff] (%p62_p0)  ;;  %v744_v13 = vld [vmem:[%s1092_s7] sm:$0xff] (%p62_p0) }
  0x13   : > { %216 = vmatpush.bf16.msrb.mxu1 %v600_v22  ;;  %180 = vmatpush.bf16.msra.mxu2 %v592_v27  ;;  %v75_v30 = vld [vmem:[#allocation1] sm:$0xff]  ;;  %v76_v31 = vld [vmem:[#allocation1 + $0x9] sm:$0xff] }
  0x14   : > { %235 = vmatpush.bf16.msrb.mxu3 %v608_v23  ;;  %143 = vmatpush.bf16.msra.mxu0 %v592_v27  ;;  %172 = vst [vmem:[#allocation1] ss:$9 sm:$0xff] %v611_v29  ;;  %v770_v14 = vld [vmem:[%s1091_s6] ss:$0 sm:$0xff] (%p62_p0) }
  0x15   : > { %609 = vmatmul.msk.bf16.vlgmr.msra.gmra.mxu1 %vm138_vm0, %v76_v31  ;;  %v771_v20 = vld [vmem:[%s1093_s8] ss:$0 sm:$0xff] (%p62_p0) }
  0x17   : > { %217 = vmatpush.bf16.msrb.mxu1 %v596_v24  ;;  %181 = vmatpush.bf16.msra.mxu2 %v588_v28 }
  0x18   : > { %236 = vmatpush.bf16.msrb.mxu3 %v604_v25  ;;  %144 = vmatpush.bf16.msra.mxu0 %v588_v28 }
  0x1b   : > { %218 = vmatpush.bf16.msrb.mxu1 %v592_v27  ;;  %182 = vmatpush.bf16.msra.mxu2 %v584_v32  ;;  %v174_v35 = vld [vmem:[#allocation1 + $0x9] sm:$0xff]  ;;  %v173_v36 = vld [vmem:[#allocation1] sm:$0xff] }
  0x1c   : > { %145 = vmatpush.bf16.msra.mxu0 %v584_v32  ;;  %612 = vmatmul.msk.bf16.vlgmr.msra.gmra.mxu3 %vm138_vm0, %v174_v35  ;;  %210 = vst [vmem:[#allocation1] ss:$9 sm:$0xff] %v614_v34 }
  0x1d   : > { %253 = vmatpush.bf16.msra.mxu3 %v600_v22 }
  0x1f   : > { %219 = vmatpush.bf16.msrb.mxu1 %v588_v28  ;;  %183 = vmatpush.bf16.msra.mxu2 %v580_v33 }
  0x20   : > { %146 = vmatpush.bf16.msra.mxu0 %v580_v33 }
  0x21   : > { %254 = vmatpush.bf16.msra.mxu3 %v596_v24 }
  0x23   : > { %220 = vmatpush.bf16.msrb.mxu1 %v584_v32  ;;  %184 = vmatpush.bf16.msra.mxu2 %v576_v37  ;;  %v212_v40 = vld [vmem:[#allocation1 + $0x9] sm:$0xff]  ;;  %v211_v41 = vld [vmem:[#allocation1] sm:$0xff] }
  0x24   : > { %147 = vmatpush.bf16.msra.mxu0 %v576_v37  ;;  %247 = vst [vmem:[#allocation1] ss:$9 sm:$0xff] %v617_v39 }
  0x25   : > { %255 = vmatpush.bf16.msra.mxu3 %v592_v27 }
  0x27   : > { %221 = vmatpush.bf16.msrb.mxu1 %v580_v33  ;;  %185 = vmatpush.bf16.msra.mxu2 %v572_v38 }
  0x28   : > { %148 = vmatpush.bf16.msra.mxu0 %v572_v38 }
  0x29   : > { %256 = vmatpush.bf16.msra.mxu3 %v588_v28 }
  0x2a   : > { %186 = vmatmul.bf16.vlgmr.msra.gmra.mxu2 %v173_v36 }
  0x2b   : > { %222 = vmatpush.bf16.msrb.mxu1 %v576_v37  ;;  %149 = vmatmul.bf16.vlgmr.msra.gmra.mxu0 %v75_v30  ;;  %v249_v42 = vld [vmem:[#allocation1 + $0x9] sm:$0xff]  ;;  %v248_v43 = vld [vmem:[#allocation1] sm:$0xff] }
  0x2c   : > { %272 = vmatpush.bf16.msrb.mxu0 %v608_v23  ;;  %615 = vmatmul.msk.bf16.vlgmr.msrb.gmra.mxu3 %vm138_vm0, %v212_v40 }
  0x2d   : > { %257 = vmatpush.bf16.msra.mxu3 %v584_v32  ;;  %350 = vmatpush.bf16.msrb.mxu2 %v735_v44 }
  0x2f   : > { %223 = vmatpush.bf16.msrb.mxu1 %v572_v38 }
  0x30   : > { %273 = vmatpush.bf16.msrb.mxu0 %v604_v25 }
  0x31   : > { %258 = vmatpush.bf16.msra.mxu3 %v580_v33  ;;  %351 = vmatpush.bf16.msrb.mxu2 %v734_v45 }
  0x32   : > { %224 = vmatmul.bf16.vlgmr.msrb.gmra.mxu1 %v211_v41 }
  0x35   : > { %259 = vmatpush.bf16.msra.mxu3 %v576_v37  ;;  %352 = vmatpush.bf16.msrb.mxu2 %v733_v47  ;;  %v742_v47 = vld [vmem:[%s1090_s5 + $0x30] sm:$0xff] (%p62_p0) }
  0x39   : > { %260 = vmatpush.bf16.msra.mxu3 %v572_v38  ;;  %353 = vmatpush.bf16.msrb.mxu2 %v732_v48  ;;  %v750_v48 = vld [vmem:[%s1092_s7 + $0x30] sm:$0xff] (%p62_p0) }
  0x3b   : > { %618 = vmatmul.msk.bf16.vlgmr.msrb.gmra.mxu0 %vm138_vm0, %v249_v42 }
  0x3c   : > { %261 = vmatmul.bf16.vlgmr.msra.gmra.mxu3 %v248_v43 }
  0x3d   : > { %354 = vmatpush.bf16.msrb.mxu2 %v731_v50 }
  0x41   : > { %355 = vmatpush.bf16.msrb.mxu2 %v730_v52 }
  0x45   : > { %356 = vmatpush.bf16.msrb.mxu2 %v729_v53 }
  0x49   : > { %357 = vmatpush.bf16.msrb.mxu2 %v728_v56 }
  0x92   : > { %v163_v46 = vpop.f32.mrf.mxu1 }
  0x9a   : > { %v165_v49 = vpop.f32.mrf.mxu1 }
  0x9f   : > { %v200_v51 = vpop.f32.mrf.mxu3 }
  0xa7   : > { %v202_v55 = vpop.f32.mrf.mxu3 }
  0xa8   : > { %v150_v54 = vpop.f32.mrf.mxu0 }
  0xa9   : > { %v151_v24 = vadd.f32 %v150_v54, %v71_v63 }
  0xab   : > { %v164_v27 = vadd.f32 %v163_v46, %v151_v24  ;;  %v743_v46 = vld [vmem:[%s1090_s5 + $0x38] sm:$0xff] (%p62_p0) }
  0xac   :  { %434 = vmatpush.bf16.msra.mxu0 (%p62_p0), %v743_v46 }
  0xad   : > { %v187_v58 = vpop.f32.mrf.mxu2  ;;  %v167_v33 = vmax.f32 %v164_v27, 0.0 }
  0xae   : > { %v188_v25 = vadd.f32 %v187_v58, %v71_v63 }
  0xaf   : > { %v225_v57 = vpop.f32.mrf.mxu1  ;;  %v238_v60 = vpop.f32.mrf.mxu3 }
  0xb0   : > { %v152_v59 = vpop.f32.mrf.mxu0  ;;  %v226_v26 = vadd.f32 %v225_v57, %v71_v63  ;;  %v201_v28 = vadd.f32 %v200_v51, %v188_v25  ;;  %435 = vmatpush.bf16.msra.mxu0 (%p62_p0), %v742_v47 }
  0xb2   : > { %v239_v31 = vadd.f32 %v238_v60, %v226_v26  ;;  %v204_v34 = vmax.f32 %v201_v28, 0.0 }
  0xb4   : > { %v242_v36 = vmax.f32 %v239_v31, 0.0  ;;  %v205_v38 = vmax.f32 %v167_v33, %v204_v34  ;;  %436 = vmatpush.bf16.msra.mxu0 (%p62_p0), %v741_v0 }
  0xb5   : > { %v189_v62 = vpop.f32.mrf.mxu2 }
  0xb7   : > { %v227_v61 = vpop.f32.mrf.mxu1  ;;  %v240_v23 = vpop.f32.mrf.mxu3 }
  0xb8   : > { %v275_v22 = vpop.f32.mrf.mxu0  ;;  %437 = vmatpush.bf16.msra.mxu0 (%p62_p0), %v740_v2 }
  0xbc   :  { %438 = vmatpush.bf16.msra.mxu0 (%p62_p0), %v739_v4 }
  0xbf   : > { %v262_v30 = vpop.f32.mrf.mxu3 }
  0xc0   : > { %v277_v29 = vpop.f32.mrf.mxu0  ;;  %v263_v32 = vadd.f32 %v262_v30, %v71_v63  ;;  %439 = vmatpush.bf16.msra.mxu0 (%p62_p0), %v738_v6 }
  0xc2   : > { %v276_v35 = vadd.f32 %v275_v22, %v263_v32 }
  0xc4   : > { %v279_v37 = vmax.f32 %v276_v35, 0.0  ;;  %440 = vmatpush.bf16.msra.mxu0 (%p62_p0), %v737_v8 }
  0xc6   : > { %v280_v39 = vmax.f32 %v242_v36, %v279_v37 }
  0xc7   : > { %v264_v40 = vpop.f32.mrf.mxu3 }
  0xc8   : > { %v281_v41 = vmax.f32 %v205_v38, %v280_v39  ;;  %441 = vmatpush.bf16.msra.mxu0 (%p62_p0), %v736_v10 }
  0xca   : > { %v282_v42 = vpack.c.bf16 %v281_v41, %v281_v41 }
  0xcc   : > { %358 = vmatmul.bf16.vlgmr.msrb.gmra.mxu2 %v282_v42 }
 0x14f   : > { %v359_v43 = vpop.f32.mrf.mxu2 }
 0x150   : > { %v363_v44 = vadd.f32 %v808_v21, %v359_v43  }
 0x152   : > { %v1095_v21 = vmov %v363_v44  ;;  %v364_v9 = vmax.f32 (%p62_p0), %v363_v44, 0.0 }
 0x153   :  { %64 = sbr.rel (!%p62_p0) target bundleno = 9 (0x9), region = 68  ;;  %v751_v21 = vld [vmem:[%s1092_s7 + $0x38] sm:$0xff] (%p62_p0)  ;;  %s538_s7 = sshll.u32 (%p62_p0), %s1094_s9, 4  ;;  %s539_s7 = int_to_ptr.hbm [resolvable:$true] %s538_s7 }
 0x154   :  { %517 = vmatpush.bf16.msra.mxu1 (%p62_p0), %v751_v21  ;;  %v365_v11 = vpack.c.bf16 (%p62_p0), %v364_v9, %v364_v9 }
 0x156   :  { %442 = vmatmul.bf16.vlgmr.msra.gmra.mxu0 (%p62_p0), %v365_v11 }
 0x157   : > { %v361_v45 = vpop.f32.mrf.mxu2 }
 0x158   :  { %518 = vmatpush.bf16.msra.mxu1 %v750_v48 }
 0x15c   :  { %519 = vmatpush.bf16.msra.mxu1 %v749_v1 }
 0x160   :  { %520 = vmatpush.bf16.msra.mxu1 %v748_v3 }
 0x164   :  { %521 = vmatpush.bf16.msra.mxu1 %v747_v5 }
 0x168   :  { %522 = vmatpush.bf16.msra.mxu1 %v746_v7 }
 0x16c   :  { %523 = vmatpush.bf16.msra.mxu1 %v745_v12 }
 0x170   :  { %524 = vmatpush.bf16.msra.mxu1 %v744_v13 }
 0x1d3   :  { %v443_v15 = vpop.f32.mrf.mxu0 }
 0x1d4   :  { %v444_v16 = vadd.f32 %v770_v14, %v443_v15 }
 0x1d6   :  { %v447_v17 = vmax.f32 %v444_v16, 0.0 }
 0x1d8   :  { %v448_v18 = vpack.c.bf16 %v447_v17, %v447_v17 }
 0x1da   :  { %525 = vmatmul.bf16.vlgmr.msra.gmra.mxu1 %v448_v18 }
 0x1db   :  { %v445_v19 = vpop.f32.mrf.mxu0 }
 0x257   :  { %v526_v49 = vpop.f32.mrf.mxu1 }
 0x258   :  { %v527_v50 = vadd.f32 %v771_v20, %v526_v49 }
 0x25a   :  { %530 = vst [vmem:[#allocation2] sm:$0x3] %v527_v50 }
 0x25b   :  { %541 = dma.vmem_to_hbm [thread:$0]  %s537_s3, 32, %s539_s7, [#allocation3]  }
 0x25f   :  { %v528_v51 = vpop.f32.mrf.mxu1 }
 0x260   :  { %804 = dma.done.wait [#allocation3], 32  }
 0x261   :  { %805 = vsyncadd [#allocation3], 4294967264 }
 0x262   :  { %546 = vsyncpa [#allocation3], 1 }

</bundles_post_ra>
